<compile_context>
chip_gen: v7x
topology: tpu7x:2x2x1
jax: 0.10.0
libtpu: 0.0.40
codegen_flags: <defaults>
</compile_context>

<pallas_src>
import functools

import numpy as np
import jax
import jax.numpy as jnp
from jax import lax
from jax.experimental import pallas as pl
from jax.experimental.pallas import tpu as pltpu

BN_EPS = 1e-5


# ----------------------------------------------------------------------------
# Host-side helpers: resampling matrices and folded/banded conv weights
# ----------------------------------------------------------------------------
def _up_matrix(s_in, s_out):
    """Bilinear interpolation matrix (align_corners=True), shape (s_out, s_in)."""
    m = np.zeros((s_out, s_in), np.float32)
    if s_in == 1:
        m[:, 0] = 1.0
        return m
    scale = (s_in - 1) / (s_out - 1)
    for i in range(s_out):
        src = i * scale
        f = min(int(np.floor(src)), s_in - 2)
        w = src - f
        m[i, f] = 1.0 - w
        m[i, f + 1] = w
    return m


def _down_matrix(s_in):
    """AvgPool2d(kernel=2, stride=2) row matrix, shape (s_in//2, s_in)."""
    s_out = s_in // 2
    m = np.zeros((s_out, s_in), np.float32)
    for i in range(s_out):
        m[i, 2 * i] = 0.5
        m[i, 2 * i + 1] = 0.5
    return m


def _block_diag(mat, n):
    r, c = mat.shape
    out = np.zeros((n * r, n * c), np.float32)
    for i in range(n):
        out[i * r:(i + 1) * r, i * c:(i + 1) * c] = mat
    return out


def _band_matrix(wfold, w):
    """(k*cin*w, cout*w) weight matrix with ky taps + channels in the contraction.

    LHS row layout: slot ky holds the (unpadded) input slab shifted vertically
    by (ky - p) rows.  Horizontal 'same' padding is folded in here: out-of-range
    taps are simply absent.  Reproduces PyTorch Conv2d cross-correlation.
    """
    cout, cin, k, _ = wfold.shape
    p = (k - 1) // 2
    B = np.zeros((k * cin * w, cout * w), np.float32)
    for ky in range(k):
        for ci in range(cin):
            base = ky * cin * w + ci * w
            for co in range(cout):
                for x in range(w):
                    for kx in range(k):
                        u = x + kx - p
                        if 0 <= u < w:
                            B[base + u, co * w + x] = wfold[co, ci, ky, kx]
    return B


# ----------------------------------------------------------------------------
# Pallas kernel: one batch element of FeaturePyramidAttention_v2 (mode='std')
# ----------------------------------------------------------------------------
def _fpa_kernel(x_ref, b7a_ref, b7b_ref, b5a_ref, b5b_ref, b3a_ref, b3b_ref,
                m1_ref, gpp_ref, gpe_ref, rsL_ref, rsR_ref, brow_ref,
                o_ref, pad7_ref, pad5_ref, pad3_ref, *,
                cin, cout, H, W, rsL_meta, rsR_meta):
    f32, bf16 = jnp.float32, jnp.bfloat16
    H2, W2 = H // 2, W // 2
    H4, W4 = H // 4, W // 4
    H8, W8 = H // 8, W // 8

    def conv_banded(S, band_ref, bias_idx, k, n_in, n_out, h, w, pad_ref):
        # KxK 'same' conv + folded BN + ReLU == ONE MXU matmul on a slab LHS.
        p = (k - 1) // 2
        cw = n_in * w
        pad_ref[...] = jnp.zeros(pad_ref.shape, f32)        # vertical zero padding
        for ky in range(k):                                 # k un-sliced stores
            o = (k - 1) - ky
            pad_ref[o:o + h, ky * cw:(ky + 1) * cw] = S
        lhs = pad_ref[p:p + h, :k * cw].astype(bf16)        # (h, k*n_in*w)
        acc = jnp.dot(lhs, band_ref[...], preferred_element_type=f32)
        return jnp.maximum(acc + brow_ref[bias_idx:bias_idx + 1, :n_out * w], 0.0)

    def resample(S, lname, rname):
        # avgpool / bilinear-x2 (align_corners=True): L @ slab @ blockdiag(R).
        il, lr, lc = rsL_meta[lname]
        ir, rr, rc = rsR_meta[rname]
        t = jnp.dot(rsL_ref[il, :lr, :lc], S.astype(bf16),
                    preferred_element_type=f32)
        return jnp.dot(t.astype(bf16), rsR_ref[ir, :rr, :rc],
                       preferred_element_type=f32)

    xs = x_ref[0].astype(f32)                               # (H, cin*W) slab

    # ---- pyramid: downsample -> convKa, then convKb -------------------------
    d1 = resample(xs, "dLH", "dRW")                         # (H/2, cin*W/2)
    u7a = conv_banded(d1, b7a_ref, 0, 7, cin, cout, H2, W2, pad7_ref)
    d2 = resample(u7a, "dLH2", "dRW2")                      # (H/4, cout*W/4)
    u5a = conv_banded(d2, b5a_ref, 2, 5, cout, cout, H4, W4, pad5_ref)
    d3 = resample(u5a, "dLH4", "dRW4")                      # (H/8, cout*W/8)
    u3a = conv_banded(d3, b3a_ref, 4, 3, cout, cout, H8, W8, pad3_ref)

    u7b = conv_banded(u7a, b7b_ref, 1, 7, cout, cout, H2, W2, pad7_ref)
    u5b = conv_banded(u5a, b5b_ref, 3, 5, cout, cout, H4, W4, pad5_ref)
    u3b = conv_banded(u3a, b3b_ref, 5, 3, cout, cout, H8, W8, pad3_ref)

    x2 = resample(u3b, "uLH8", "uRW8") + u5b                # (H/4, cout*W/4)
    x1p = resample(x2, "uLH4", "uRW4") + u7b                # (H/2, cout*W/2)
    up1 = resample(x1p, "uLH2", "uRW2")                     # (H,   cout*W)

    # ---- full-resolution branches last (short live ranges) ------------------
    x1 = jnp.maximum(
        jnp.dot(xs.astype(bf16), m1_ref[...], preferred_element_type=f32)
        + brow_ref[6:7, :cout * W], 0.0)                    # 1x1 conv + BN + ReLU

    # GPool branch: bilinear upsample of a 1x1 map (align_corners) == broadcast.
    colsum = jnp.sum(xs, axis=0, keepdims=True)             # (1, cin*W)
    g = jnp.dot(colsum.astype(bf16), gpp_ref[...], preferred_element_type=f32)
    gp_row = jnp.maximum(
        jnp.dot(g.astype(bf16), gpe_ref[...], preferred_element_type=f32)
        + brow_ref[7:8, :cout * W], 0.0)                    # (1, cout*W)

    # ---- combine: single lane-dense store ------------------------------------
    o_ref[0] = (up1 * x1 + gp_row).astype(o_ref.dtype)


# ----------------------------------------------------------------------------
# Wrapper
# ----------------------------------------------------------------------------
def fpa_forward(x, packed):
    N, cin, H, W = x.shape
    cout = packed["cout"]
    assert H % 8 == 0 and W % 8 == 0 and H >= 8 and W >= 8, \
        "spatial dims must be divisible by 8 (three 2x downsamples)"
    cmax = max(cin, cout)
    H2, W2, H4, W4, H8, W8 = H // 2, W // 2, H // 4, W // 4, H // 8, W // 8

    # layout plumbing only: NCHW -> lane-concatenated slab (N, H, C*W)
    xs = x.transpose(0, 2, 1, 3).reshape(N, H, cin * W)

    kernel = functools.partial(
        _fpa_kernel, cin=cin, cout=cout, H=H, W=W,
        rsL_meta=packed["rsL_meta"], rsR_meta=packed["rsR_meta"])

    # constant matrices: whole-array, single-copy VMEM residents (not pipelined)
    vmem_const = pl.BlockSpec(memory_space=pltpu.MemorySpace.VMEM)

    out_slab = pl.pallas_call(
        kernel,
        out_shape=jax.ShapeDtypeStruct((N, H, cout * W), x.dtype),
        grid_spec=pltpu.PrefetchScalarGridSpec(
            num_scalar_prefetch=0,
            grid=(N,),
            in_specs=[pl.BlockSpec((1, H, cin * W), lambda n: (n, 0, 0))]
                     + [vmem_const] * 12,
            out_specs=pl.BlockSpec((1, H, cout * W), lambda n: (n, 0, 0)),
            scratch_shapes=[
                pltpu.VMEM((H2 + 6, 7 * cmax * W2), jnp.float32),  # 7x7 LHS slab
                pltpu.VMEM((H4 + 4, 5 * cmax * W4), jnp.float32),  # 5x5 LHS slab
                pltpu.VMEM((H8 + 2, 3 * cmax * W8), jnp.float32),  # 3x3 LHS slab
            ]),
        compiler_params=pltpu.CompilerParams(
            dimension_semantics=("parallel",),          # batch across TCs
            vmem_limit_bytes=32 * 1024 * 1024),         # fits v5e/v6e/v7x
    )(xs, *packed["bands"], packed["m1"], packed["gpp"], packed["gpe"],
      packed["rsL"], packed["rsR"], packed["brow"])

    return out_slab.reshape(N, H, cout, W).transpose(0, 2, 1, 3)


# ----------------------------------------------------------------------------
# Parameter packing (BN folding, banded weights, resample matrices)
# ----------------------------------------------------------------------------
def pack_params(params, cin, cout, H, W):
    H2, W2, H4, W4, H8, W8 = H // 2, W // 2, H // 4, W // 4, H // 8, W // 8
    bf16 = jnp.bfloat16

    def fold(p):
        scale = np.asarray(p["gamma"]) / np.sqrt(np.asarray(p["var"]) + BN_EPS)
        wf = np.asarray(p["w"], np.float32) * scale[:, None, None, None]
        bf = (np.asarray(p["b"]) - np.asarray(p["mean"])) * scale + np.asarray(p["beta"])
        return np.asarray(wf, np.float32), np.asarray(bf, np.float32)

    folded = {nm: fold(p) for nm, p in params.items()}

    # banded conv weight matrices (ky + channels folded), unpadded, bf16
    band_specs = [("conv7a", W2), ("conv7b", W2), ("conv5a", W4),
                  ("conv5b", W4), ("conv3a", W8), ("conv3b", W8)]
    bands = [jnp.asarray(_band_matrix(folded[nm][0], w), bf16)
             for nm, w in band_specs]

    # per-conv bias rows (f32, lane-replicated per output channel)
    brow = np.zeros((8, cout * W), np.float32)
    for i, (nm, w) in enumerate(band_specs):
        for co in range(cout):
            brow[i, co * w:(co + 1) * w] = folded[nm][1][co]
    for co in range(cout):
        brow[6, co * W:(co + 1) * W] = folded["conv1"][1][co]
        brow[7, co * W:(co + 1) * W] = folded["conv1p"][1][co]

    # conv1 as a diagonal-block matrix acting on the (H, cin*W) slab
    # TODO(synk): for large cin*W / cout*W this matrix should be tiled or the
    # 1x1 conv done channels-last on the MXU; fine at small channel counts.
    w1 = folded["conv1"][0][:, :, 0, 0]
    m1 = np.zeros((cin * W, cout * W), np.float32)
    for co in range(cout):
        for ci in range(cin):
            for x in range(W):
                m1[ci * W + x, co * W + x] = w1[co, ci]

    # GPool branch: column-sums -> channel means -> conv1p -> lane expansion
    w1p = folded["conv1p"][0][:, :, 0, 0]
    gpp = np.zeros((cin * W, cout), np.float32)
    for co in range(cout):
        for ci in range(cin):
            gpp[ci * W:(ci + 1) * W, co] = w1p[co, ci] / float(H * W)
    gpe = np.zeros((cout, cout * W), np.float32)
    for co in range(cout):
        gpe[co, co * W:(co + 1) * W] = 1.0

    # resampling: row matrices L and block-diagonal (per-channel) lane matrices R
    L_specs = [("dLH", _down_matrix(H)), ("dLH2", _down_matrix(H2)),
               ("dLH4", _down_matrix(H4)), ("uLH8", _up_matrix(H8, H4)),
               ("uLH4", _up_matrix(H4, H2)), ("uLH2", _up_matrix(H2, H))]
    R_specs = [("dRW", _block_diag(_down_matrix(W).T, cin)),
               ("dRW2", _block_diag(_down_matrix(W2).T, cout)),
               ("dRW4", _block_diag(_down_matrix(W4).T, cout)),
               ("uRW8", _block_diag(_up_matrix(W8, W4).T, cout)),
               ("uRW4", _block_diag(_up_matrix(W4, W2).T, cout)),
               ("uRW2", _block_diag(_up_matrix(W2, W).T, cout))]

    def pack(specs):
        r = max(m.shape[0] for _, m in specs)
        c = max(m.shape[1] for _, m in specs)
        arr = np.zeros((len(specs), r, c), np.float32)
        meta = {}
        for i, (nm, m) in enumerate(specs):
            arr[i, :m.shape[0], :m.shape[1]] = m
            meta[nm] = (i, m.shape[0], m.shape[1])
        return jnp.asarray(arr, bf16), meta

    rsL, rsL_meta = pack(L_specs)
    rsR, rsR_meta = pack(R_specs)

    return dict(bands=bands, brow=jnp.asarray(brow),
                m1=jnp.asarray(m1, bf16), gpp=jnp.asarray(gpp, bf16),
                gpe=jnp.asarray(gpe, bf16), rsL=rsL, rsR=rsR,
                rsL_meta=rsL_meta, rsR_meta=rsR_meta, cout=cout)


# ----------------------------------------------------------------------------
# Deterministic synthetic parameters (PyTorch layouts)
# ----------------------------------------------------------------------------
def make_convbn(key, cin, cout, k):
    kw, kb, kg, kbt, km, kv = jax.random.split(key, 6)
    return dict(
        w=0.1 * jax.random.normal(kw, (cout, cin, k, k), jnp.float32),  # OIHW
        b=0.1 * jax.random.normal(kb, (cout,), jnp.float32),
        gamma=1.0 + 0.1 * jax.random.normal(kg, (cout,), jnp.float32),
        beta=0.1 * jax.random.normal(kbt, (cout,), jnp.float32),
        mean=0.1 * jax.random.normal(km, (cout,), jnp.float32),
        var=jax.random.uniform(kv, (cout,), jnp.float32, 0.5, 1.5),
    )


# ----------------------------------------------------------------------------
# Pure-JAX reference (correctness check only)
# ----------------------------------------------------------------------------
def convbn_ref(x, p, padding):
    y = lax.conv_general_dilated(
        x, p["w"], window_strides=(1, 1),
        padding=((padding, padding), (padding, padding)),
        dimension_numbers=("NCHW", "OIHW", "NCHW"))
    y = y + p["b"][None, :, None, None]
    scale = p["gamma"] / jnp.sqrt(p["var"] + BN_EPS)
    y = (y - p["mean"][None, :, None, None]) * scale[None, :, None, None] \
        + p["beta"][None, :, None, None]
    return jnp.maximum(y, 0.0)


def avgpool_ref(x):
    N, C, H, W = x.shape
    return x.reshape(N, C, H // 2, 2, W // 2, 2).mean(axis=(3, 5))


def upsample_ref(x, ho, wo):
    _, _, hi, wi = x.shape
    Lh = jnp.asarray(_up_matrix(hi, ho))
    Lw = jnp.asarray(_up_matrix(wi, wo))
    return jnp.einsum("oh,nchw,pw->ncop", Lh, x, Lw)


def fpa_ref(x, params):
    N, C, H, W = x.shape
    xup1 = convbn_ref(avgpool_ref(x), params["conv7a"], 3)
    xup2 = convbn_ref(avgpool_ref(xup1), params["conv5a"], 2)
    xup3 = convbn_ref(avgpool_ref(xup2), params["conv3a"], 1)
    x1 = convbn_ref(x, params["conv1"], 0)
    xup1 = convbn_ref(xup1, params["conv7b"], 3)
    xup2 = convbn_ref(xup2, params["conv5b"], 2)
    xup3 = convbn_ref(xup3, params["conv3b"], 1)
    xup2 = upsample_ref(xup3, H // 4, W // 4) + xup2
    xup1 = upsample_ref(xup2, H // 2, W // 2) + xup1
    gp = jnp.mean(x, axis=(2, 3), keepdims=True)
    gp = convbn_ref(gp, params["conv1p"], 0)
    gp = jnp.broadcast_to(gp, (N, gp.shape[1], H, W))
    x1 = upsample_ref(xup1, H, W) * x1
    return x1 + gp


# ----------------------------------------------------------------------------
if __name__ == "__main__":
    N, C, H, W = 2, 4, 16, 16
    Cout = C                      # out_channels=None -> channels

    key = jax.random.PRNGKey(0)
    kx, kp = jax.random.split(key)
    x = jax.random.normal(kx, (N, C, H, W), jnp.float32)

    layer_specs = [("conv1", C, Cout, 1), ("conv1p", C, Cout, 1),
                   ("conv3a", Cout, Cout, 3), ("conv3b", Cout, Cout, 3),
                   ("conv5a", Cout, Cout, 5), ("conv5b", Cout, Cout, 5),
                   ("conv7a", C, Cout, 7), ("conv7b", Cout, Cout, 7)]
    keys = jax.random.split(kp, len(layer_specs))
    params = {nm: make_convbn(k_, ci, co, kk)
              for k_, (nm, ci, co, kk) in zip(keys, layer_specs)}

    packed = pack_params(params, C, Cout, H, W)

    out = jax.block_until_ready(fpa_forward(x, packed))
    ref = fpa_ref(x, params)

    assert out.shape == (N, Cout, H, W), out.shape
    max_err = float(jnp.max(jnp.abs(out - ref)))
    # Tolerance accounts for bf16 MXU weights/activations (per perf review);
    # structural errors would be orders of magnitude larger.
    assert jnp.allclose(out, ref, rtol=5e-2, atol=5e-2), max_err

    print("KERNEL_OK")
</pallas_src>

<mosaic_0001>
module attributes {stable_mosaic.version = 11 : i64} {
  func.func @_fpa_kernel(%arg0: i32, %arg1: memref<1x16x64xf32, #tpu.memory_space<vmem>>, %arg2: memref<224x32xbf16, #tpu.memory_space<vmem>>, %arg3: memref<224x32xbf16, #tpu.memory_space<vmem>>, %arg4: memref<80x16xbf16, #tpu.memory_space<vmem>>, %arg5: memref<80x16xbf16, #tpu.memory_space<vmem>>, %arg6: memref<24x8xbf16, #tpu.memory_space<vmem>>, %arg7: memref<24x8xbf16, #tpu.memory_space<vmem>>, %arg8: memref<64x64xbf16, #tpu.memory_space<vmem>>, %arg9: memref<64x4xbf16, #tpu.memory_space<vmem>>, %arg10: memref<4x64xbf16, #tpu.memory_space<vmem>>, %arg11: memref<6x16x16xbf16, #tpu.memory_space<vmem>>, %arg12: memref<6x64x64xbf16, #tpu.memory_space<vmem>>, %arg13: memref<8x64xf32, #tpu.memory_space<vmem>>, %arg14: memref<1x16x64xf32, #tpu.memory_space<vmem>>, %arg15: memref<14x224xf32, #tpu.memory_space<vmem>>, %arg16: memref<8x80xf32, #tpu.memory_space<vmem>>, %arg17: memref<4x24xf32, #tpu.memory_space<vmem>>) attributes {dimension_semantics = [#tpu.dimension_semantics<parallel>], iteration_bounds = array<i64: 2>, scalar_prefetch = 0 : i64, scratch_operands = 3 : i64, tpu.core_type = #tpu.core_type<tc>, window_params = [{transform_indices = @transform_0, window_bounds = array<i64: 1, 16, 64>}, {pipeline_mode = #tpu.pipeline_mode<synchronous>, transform_indices = @transform_1, window_bounds = array<i64: 224, 32>}, {pipeline_mode = #tpu.pipeline_mode<synchronous>, transform_indices = @transform_2, window_bounds = array<i64: 224, 32>}, {pipeline_mode = #tpu.pipeline_mode<synchronous>, transform_indices = @transform_3, window_bounds = array<i64: 80, 16>}, {pipeline_mode = #tpu.pipeline_mode<synchronous>, transform_indices = @transform_4, window_bounds = array<i64: 80, 16>}, {pipeline_mode = #tpu.pipeline_mode<synchronous>, transform_indices = @transform_5, window_bounds = array<i64: 24, 8>}, {pipeline_mode = #tpu.pipeline_mode<synchronous>, transform_indices = @transform_6, window_bounds = array<i64: 24, 8>}, {pipeline_mode = #tpu.pipeline_mode<synchronous>, transform_indices = @transform_7, window_bounds = array<i64: 64, 64>}, {pipeline_mode = #tpu.pipeline_mode<synchronous>, transform_indices = @transform_8, window_bounds = array<i64: 64, 4>}, {pipeline_mode = #tpu.pipeline_mode<synchronous>, transform_indices = @transform_9, window_bounds = array<i64: 4, 64>}, {pipeline_mode = #tpu.pipeline_mode<synchronous>, transform_indices = @transform_10, window_bounds = array<i64: 6, 16, 16>}, {pipeline_mode = #tpu.pipeline_mode<synchronous>, transform_indices = @transform_11, window_bounds = array<i64: 6, 64, 64>}, {pipeline_mode = #tpu.pipeline_mode<synchronous>, transform_indices = @transform_12, window_bounds = array<i64: 8, 64>}, {transform_indices = @transform_13, window_bounds = array<i64: 1, 16, 64>}]} {
    %c0 = arith.constant 0 : index
    %c0_0 = arith.constant 0 : index
    %c0_1 = arith.constant 0 : index
    %0 = vector.load %arg1[%c0, %c0_0, %c0_1] : memref<1x16x64xf32, #tpu.memory_space<vmem>>, vector<1x16x64xf32>
    %1 = vector.shape_cast %0 : vector<1x16x64xf32> to vector<16x64xf32>
    %c0_2 = arith.constant 0 : index
    %c0_3 = arith.constant 0 : index
    %c0_4 = arith.constant 0 : index
    %2 = vector.load %arg11[%c0_2, %c0_3, %c0_4] : memref<6x16x16xbf16, #tpu.memory_space<vmem>>, vector<1x8x16xbf16>
    %3 = vector.shape_cast %2 : vector<1x8x16xbf16> to vector<8x16xbf16>
    %4 = arith.truncf %1 : vector<16x64xf32> to vector<16x64xbf16>
    %cst = arith.constant dense<0.000000e+00> : vector<8x64xf32>
    %5 = tpu.matmul %3, %4, %cst {dimension_numbers = #tpu.dot_dimension_numbers<[1], [0], [0], [1], [0, 0, 1, 1], [], []>} : vector<8x16xbf16>, vector<16x64xbf16>, vector<8x64xf32> -> vector<8x64xf32>
    %6 = arith.truncf %5 : vector<8x64xf32> to vector<8x64xbf16>
    %c0_5 = arith.constant 0 : index
    %c0_6 = arith.constant 0 : index
    %c0_7 = arith.constant 0 : index
    %7 = vector.load %arg12[%c0_5, %c0_6, %c0_7] : memref<6x64x64xbf16, #tpu.memory_space<vmem>>, vector<1x64x32xbf16>
    %8 = vector.shape_cast %7 : vector<1x64x32xbf16> to vector<64x32xbf16>
    %cst_8 = arith.constant dense<0.000000e+00> : vector<8x32xf32>
    %9 = tpu.matmul %6, %8, %cst_8 {dimension_numbers = #tpu.dot_dimension_numbers<[1], [0], [0], [1], [0, 0, 1, 1], [], []>} : vector<8x64xbf16>, vector<64x32xbf16>, vector<8x32xf32> -> vector<8x32xf32>
    %cst_9 = arith.constant 0.000000e+00 : f32
    %10 = vector.broadcast %cst_9 : f32 to vector<14x224xf32>
    %c0_10 = arith.constant 0 : index
    %c0_11 = arith.constant 0 : index
    %11 = vector.load %arg15[%c0_10, %c0_11] : memref<14x224xf32, #tpu.memory_space<vmem>>, vector<14x224xf32>
    tpu.vector_store %arg15[%c0_10, %c0_11], %10 {strides = array<i32>} : memref<14x224xf32, #tpu.memory_space<vmem>>, vector<14x224xf32>,
    %c6 = arith.constant 6 : index
    %c0_12 = arith.constant 0 : index
    %12 = vector.load %arg15[%c6, %c0_12] : memref<14x224xf32, #tpu.memory_space<vmem>>, vector<8x32xf32>
    tpu.vector_store %arg15[%c6, %c0_12], %9 {strides = array<i32>} : memref<14x224xf32, #tpu.memory_space<vmem>>, vector<8x32xf32>,
    %c5 = arith.constant 5 : index
    %c32 = arith.constant 32 : index
    %13 = vector.load %arg15[%c5, %c32] : memref<14x224xf32, #tpu.memory_space<vmem>>, vector<8x32xf32>
    tpu.vector_store %arg15[%c5, %c32], %9 {strides = array<i32>} : memref<14x224xf32, #tpu.memory_space<vmem>>, vector<8x32xf32>,
    %c4 = arith.constant 4 : index
    %c64 = arith.constant 64 : index
    %14 = vector.load %arg15[%c4, %c64] : memref<14x224xf32, #tpu.memory_space<vmem>>, vector<8x32xf32>
    tpu.vector_store %arg15[%c4, %c64], %9 {strides = array<i32>} : memref<14x224xf32, #tpu.memory_space<vmem>>, vector<8x32xf32>,
    %c3 = arith.constant 3 : index
    %c96 = arith.constant 96 : index
    %15 = vector.load %arg15[%c3, %c96] : memref<14x224xf32, #tpu.memory_space<vmem>>, vector<8x32xf32>
    tpu.vector_store %arg15[%c3, %c96], %9 {strides = array<i32>} : memref<14x224xf32, #tpu.memory_space<vmem>>, vector<8x32xf32>,
    %c2 = arith.constant 2 : index
    %c128 = arith.constant 128 : index
    %16 = vector.load %arg15[%c2, %c128] : memref<14x224xf32, #tpu.memory_space<vmem>>, vector<8x32xf32>
    tpu.vector_store %arg15[%c2, %c128], %9 {strides = array<i32>} : memref<14x224xf32, #tpu.memory_space<vmem>>, vector<8x32xf32>,
    %c1 = arith.constant 1 : index
    %c160 = arith.constant 160 : index
    %17 = vector.load %arg15[%c1, %c160] : memref<14x224xf32, #tpu.memory_space<vmem>>, vector<8x32xf32>
    tpu.vector_store %arg15[%c1, %c160], %9 {strides = array<i32>} : memref<14x224xf32, #tpu.memory_space<vmem>>, vector<8x32xf32>,
    %c0_13 = arith.constant 0 : index
    %c192 = arith.constant 192 : index
    %18 = vector.load %arg15[%c0_13, %c192] : memref<14x224xf32, #tpu.memory_space<vmem>>, vector<8x32xf32>
    tpu.vector_store %arg15[%c0_13, %c192], %9 {strides = array<i32>} : memref<14x224xf32, #tpu.memory_space<vmem>>, vector<8x32xf32>,
    %c3_14 = arith.constant 3 : index
    %c0_15 = arith.constant 0 : index
    %19 = vector.load %arg15[%c3_14, %c0_15] : memref<14x224xf32, #tpu.memory_space<vmem>>, vector<8x224xf32>
    %20 = arith.truncf %19 : vector<8x224xf32> to vector<8x224xbf16>
    %c0_16 = arith.constant 0 : index
    %c0_17 = arith.constant 0 : index
    %21 = vector.load %arg2[%c0_16, %c0_17] : memref<224x32xbf16, #tpu.memory_space<vmem>>, vector<224x32xbf16>
    %cst_18 = arith.constant dense<0.000000e+00> : vector<8x32xf32>
    %22 = tpu.matmul %20, %21, %cst_18 {dimension_numbers = #tpu.dot_dimension_numbers<[1], [0], [0], [1], [0, 0, 1, 1], [], []>} : vector<8x224xbf16>, vector<224x32xbf16>, vector<8x32xf32> -> vector<8x32xf32>
    %c0_19 = arith.constant 0 : index
    %c0_20 = arith.constant 0 : index
    %23 = vector.load %arg13[%c0_19, %c0_20] : memref<8x64xf32, #tpu.memory_space<vmem>>, vector<1x32xf32>
    %24 = vector.broadcast %23 : vector<1x32xf32> to vector<8x32xf32>
    %25 = arith.addf %22, %24 : vector<8x32xf32>
    %cst_21 = arith.constant 0.000000e+00 : f32
    %26 = vector.broadcast %cst_21 : f32 to vector<8x32xf32>
    %27 = arith.maximumf %25, %26 : vector<8x32xf32>
    %c1_22 = arith.constant 1 : index
    %c0_23 = arith.constant 0 : index
    %c0_24 = arith.constant 0 : index
    %28 = vector.load %arg11[%c1_22, %c0_23, %c0_24] : memref<6x16x16xbf16, #tpu.memory_space<vmem>>, vector<1x4x8xbf16>
    %29 = vector.shape_cast %28 : vector<1x4x8xbf16> to vector<4x8xbf16>
    %30 = arith.truncf %27 : vector<8x32xf32> to vector<8x32xbf16>
    %cst_25 = arith.constant dense<0.000000e+00> : vector<4x32xf32>
    %31 = tpu.matmul %29, %30, %cst_25 {dimension_numbers = #tpu.dot_dimension_numbers<[1], [0], [0], [1], [0, 0, 1, 1], [], []>} : vector<4x8xbf16>, vector<8x32xbf16>, vector<4x32xf32> -> vector<4x32xf32>
    %32 = arith.truncf %31 : vector<4x32xf32> to vector<4x32xbf16>
    %c1_26 = arith.constant 1 : index
    %c0_27 = arith.constant 0 : index
    %c0_28 = arith.constant 0 : index
    %33 = vector.load %arg12[%c1_26, %c0_27, %c0_28] : memref<6x64x64xbf16, #tpu.memory_space<vmem>>, vector<1x32x16xbf16>
    %34 = vector.shape_cast %33 : vector<1x32x16xbf16> to vector<32x16xbf16>
    %cst_29 = arith.constant dense<0.000000e+00> : vector<4x16xf32>
    %35 = tpu.matmul %32, %34, %cst_29 {dimension_numbers = #tpu.dot_dimension_numbers<[1], [0], [0], [1], [0, 0, 1, 1], [], []>} : vector<4x32xbf16>, vector<32x16xbf16>, vector<4x16xf32> -> vector<4x16xf32>
    %cst_30 = arith.constant 0.000000e+00 : f32
    %36 = vector.broadcast %cst_30 : f32 to vector<8x80xf32>
    %c0_31 = arith.constant 0 : index
    %c0_32 = arith.constant 0 : index
    %37 = vector.load %arg16[%c0_31, %c0_32] : memref<8x80xf32, #tpu.memory_space<vmem>>, vector<8x80xf32>
    tpu.vector_store %arg16[%c0_31, %c0_32], %36 {strides = array<i32>} : memref<8x80xf32, #tpu.memory_space<vmem>>, vector<8x80xf32>,
    %c4_33 = arith.constant 4 : index
    %c0_34 = arith.constant 0 : index
    %38 = vector.load %arg16[%c4_33, %c0_34] : memref<8x80xf32, #tpu.memory_space<vmem>>, vector<4x16xf32>
    tpu.vector_store %arg16[%c4_33, %c0_34], %35 {strides = array<i32>} : memref<8x80xf32, #tpu.memory_space<vmem>>, vector<4x16xf32>,
    %c3_35 = arith.constant 3 : index
    %c16 = arith.constant 16 : index
    %39 = vector.load %arg16[%c3_35, %c16] : memref<8x80xf32, #tpu.memory_space<vmem>>, vector<4x16xf32>
    tpu.vector_store %arg16[%c3_35, %c16], %35 {strides = array<i32>} : memref<8x80xf32, #tpu.memory_space<vmem>>, vector<4x16xf32>,
    %c2_36 = arith.constant 2 : index
    %c32_37 = arith.constant 32 : index
    %40 = vector.load %arg16[%c2_36, %c32_37] : memref<8x80xf32, #tpu.memory_space<vmem>>, vector<4x16xf32>
    tpu.vector_store %arg16[%c2_36, %c32_37], %35 {strides = array<i32>} : memref<8x80xf32, #tpu.memory_space<vmem>>, vector<4x16xf32>,
    %c1_38 = arith.constant 1 : index
    %c48 = arith.constant 48 : index
    %41 = vector.load %arg16[%c1_38, %c48] : memref<8x80xf32, #tpu.memory_space<vmem>>, vector<4x16xf32>
    tpu.vector_store %arg16[%c1_38, %c48], %35 {strides = array<i32>} : memref<8x80xf32, #tpu.memory_space<vmem>>, vector<4x16xf32>,
    %c0_39 = arith.constant 0 : index
    %c64_40 = arith.constant 64 : index
    %42 = vector.load %arg16[%c0_39, %c64_40] : memref<8x80xf32, #tpu.memory_space<vmem>>, vector<4x16xf32>
    tpu.vector_store %arg16[%c0_39, %c64_40], %35 {strides = array<i32>} : memref<8x80xf32, #tpu.memory_space<vmem>>, vector<4x16xf32>,
    %c2_41 = arith.constant 2 : index
    %c0_42 = arith.constant 0 : index
    %43 = vector.load %arg16[%c2_41, %c0_42] : memref<8x80xf32, #tpu.memory_space<vmem>>, vector<4x80xf32>
    %44 = arith.truncf %43 : vector<4x80xf32> to vector<4x80xbf16>
    %c0_43 = arith.constant 0 : index
    %c0_44 = arith.constant 0 : index
    %45 = vector.load %arg4[%c0_43, %c0_44] : memref<80x16xbf16, #tpu.memory_space<vmem>>, vector<80x16xbf16>
    %cst_45 = arith.constant dense<0.000000e+00> : vector<4x16xf32>
    %46 = tpu.matmul %44, %45, %cst_45 {dimension_numbers = #tpu.dot_dimension_numbers<[1], [0], [0], [1], [0, 0, 1, 1], [], []>} : vector<4x80xbf16>, vector<80x16xbf16>, vector<4x16xf32> -> vector<4x16xf32>
    %c2_46 = arith.constant 2 : index
    %c0_47 = arith.constant 0 : index
    %47 = vector.load %arg13[%c2_46, %c0_47] : memref<8x64xf32, #tpu.memory_space<vmem>>, vector<1x16xf32>
    %48 = vector.broadcast %47 : vector<1x16xf32> to vector<4x16xf32>
    %49 = arith.addf %46, %48 : vector<4x16xf32>
    %cst_48 = arith.constant 0.000000e+00 : f32
    %50 = vector.broadcast %cst_48 : f32 to vector<4x16xf32>
    %51 = arith.maximumf %49, %50 : vector<4x16xf32>
    %c2_49 = arith.constant 2 : index
    %c0_50 = arith.constant 0 : index
    %c0_51 = arith.constant 0 : index
    %52 = vector.load %arg11[%c2_49, %c0_50, %c0_51] : memref<6x16x16xbf16, #tpu.memory_space<vmem>>, vector<1x2x4xbf16>
    %53 = vector.shape_cast %52 : vector<1x2x4xbf16> to vector<2x4xbf16>
    %54 = arith.truncf %51 : vector<4x16xf32> to vector<4x16xbf16>
    %cst_52 = arith.constant dense<0.000000e+00> : vector<2x16xf32>
    %55 = tpu.matmul %53, %54, %cst_52 {dimension_numbers = #tpu.dot_dimension_numbers<[1], [0], [0], [1], [0, 0, 1, 1], [], []>} : vector<2x4xbf16>, vector<4x16xbf16>, vector<2x16xf32> -> vector<2x16xf32>
    %56 = arith.truncf %55 : vector<2x16xf32> to vector<2x16xbf16>
    %c2_53 = arith.constant 2 : index
    %c0_54 = arith.constant 0 : index
    %c0_55 = arith.constant 0 : index
    %57 = vector.load %arg12[%c2_53, %c0_54, %c0_55] : memref<6x64x64xbf16, #tpu.memory_space<vmem>>, vector<1x16x8xbf16>
    %58 = vector.shape_cast %57 : vector<1x16x8xbf16> to vector<16x8xbf16>
    %cst_56 = arith.constant dense<0.000000e+00> : vector<2x8xf32>
    %59 = tpu.matmul %56, %58, %cst_56 {dimension_numbers = #tpu.dot_dimension_numbers<[1], [0], [0], [1], [0, 0, 1, 1], [], []>} : vector<2x16xbf16>, vector<16x8xbf16>, vector<2x8xf32> -> vector<2x8xf32>
    %cst_57 = arith.constant 0.000000e+00 : f32
    %60 = vector.broadcast %cst_57 : f32 to vector<4x24xf32>
    %c0_58 = arith.constant 0 : index
    %c0_59 = arith.constant 0 : index
    %61 = vector.load %arg17[%c0_58, %c0_59] : memref<4x24xf32, #tpu.memory_space<vmem>>, vector<4x24xf32>
    tpu.vector_store %arg17[%c0_58, %c0_59], %60 {strides = array<i32>} : memref<4x24xf32, #tpu.memory_space<vmem>>, vector<4x24xf32>,
    %c2_60 = arith.constant 2 : index
    %c0_61 = arith.constant 0 : index
    %62 = vector.load %arg17[%c2_60, %c0_61] : memref<4x24xf32, #tpu.memory_space<vmem>>, vector<2x8xf32>
    tpu.vector_store %arg17[%c2_60, %c0_61], %59 {strides = array<i32>} : memref<4x24xf32, #tpu.memory_space<vmem>>, vector<2x8xf32>,
    %c1_62 = arith.constant 1 : index
    %c8 = arith.constant 8 : index
    %63 = vector.load %arg17[%c1_62, %c8] : memref<4x24xf32, #tpu.memory_space<vmem>>, vector<2x8xf32>
    tpu.vector_store %arg17[%c1_62, %c8], %59 {strides = array<i32>} : memref<4x24xf32, #tpu.memory_space<vmem>>, vector<2x8xf32>,
    %c0_63 = arith.constant 0 : index
    %c16_64 = arith.constant 16 : index
    %64 = vector.load %arg17[%c0_63, %c16_64] : memref<4x24xf32, #tpu.memory_space<vmem>>, vector<2x8xf32>
    tpu.vector_store %arg17[%c0_63, %c16_64], %59 {strides = array<i32>} : memref<4x24xf32, #tpu.memory_space<vmem>>, vector<2x8xf32>,
    %c1_65 = arith.constant 1 : index
    %c0_66 = arith.constant 0 : index
    %65 = vector.load %arg17[%c1_65, %c0_66] : memref<4x24xf32, #tpu.memory_space<vmem>>, vector<2x24xf32>
    %66 = arith.truncf %65 : vector<2x24xf32> to vector<2x24xbf16>
    %c0_67 = arith.constant 0 : index
    %c0_68 = arith.constant 0 : index
    %67 = vector.load %arg6[%c0_67, %c0_68] : memref<24x8xbf16, #tpu.memory_space<vmem>>, vector<24x8xbf16>
    %cst_69 = arith.constant dense<0.000000e+00> : vector<2x8xf32>
    %68 = tpu.matmul %66, %67, %cst_69 {dimension_numbers = #tpu.dot_dimension_numbers<[1], [0], [0], [1], [0, 0, 1, 1], [], []>} : vector<2x24xbf16>, vector<24x8xbf16>, vector<2x8xf32> -> vector<2x8xf32>
    %c4_70 = arith.constant 4 : index
    %c0_71 = arith.constant 0 : index
    %69 = vector.load %arg13[%c4_70, %c0_71] : memref<8x64xf32, #tpu.memory_space<vmem>>, vector<1x8xf32>
    %70 = vector.broadcast %69 : vector<1x8xf32> to vector<2x8xf32>
    %71 = arith.addf %68, %70 : vector<2x8xf32>
    %cst_72 = arith.constant 0.000000e+00 : f32
    %72 = vector.broadcast %cst_72 : f32 to vector<2x8xf32>
    %73 = arith.maximumf %71, %72 : vector<2x8xf32>
    %cst_73 = arith.constant 0.000000e+00 : f32
    %74 = vector.broadcast %cst_73 : f32 to vector<14x224xf32>
    %c0_74 = arith.constant 0 : index
    %c0_75 = arith.constant 0 : index
    %75 = vector.load %arg15[%c0_74, %c0_75] : memref<14x224xf32, #tpu.memory_space<vmem>>, vector<14x224xf32>
    tpu.vector_store %arg15[%c0_74, %c0_75], %74 {strides = array<i32>} : memref<14x224xf32, #tpu.memory_space<vmem>>, vector<14x224xf32>,
    %c6_76 = arith.constant 6 : index
    %c0_77 = arith.constant 0 : index
    %76 = vector.load %arg15[%c6_76, %c0_77] : memref<14x224xf32, #tpu.memory_space<vmem>>, vector<8x32xf32>
    tpu.vector_store %arg15[%c6_76, %c0_77], %27 {strides = array<i32>} : memref<14x224xf32, #tpu.memory_space<vmem>>, vector<8x32xf32>,
    %c5_78 = arith.constant 5 : index
    %c32_79 = arith.constant 32 : index
    %77 = vector.load %arg15[%c5_78, %c32_79] : memref<14x224xf32, #tpu.memory_space<vmem>>, vector<8x32xf32>
    tpu.vector_store %arg15[%c5_78, %c32_79], %27 {strides = array<i32>} : memref<14x224xf32, #tpu.memory_space<vmem>>, vector<8x32xf32>,
    %c4_80 = arith.constant 4 : index
    %c64_81 = arith.constant 64 : index
    %78 = vector.load %arg15[%c4_80, %c64_81] : memref<14x224xf32, #tpu.memory_space<vmem>>, vector<8x32xf32>
    tpu.vector_store %arg15[%c4_80, %c64_81], %27 {strides = array<i32>} : memref<14x224xf32, #tpu.memory_space<vmem>>, vector<8x32xf32>,
    %c3_82 = arith.constant 3 : index
    %c96_83 = arith.constant 96 : index
    %79 = vector.load %arg15[%c3_82, %c96_83] : memref<14x224xf32, #tpu.memory_space<vmem>>, vector<8x32xf32>
    tpu.vector_store %arg15[%c3_82, %c96_83], %27 {strides = array<i32>} : memref<14x224xf32, #tpu.memory_space<vmem>>, vector<8x32xf32>,
    %c2_84 = arith.constant 2 : index
    %c128_85 = arith.constant 128 : index
    %80 = vector.load %arg15[%c2_84, %c128_85] : memref<14x224xf32, #tpu.memory_space<vmem>>, vector<8x32xf32>
    tpu.vector_store %arg15[%c2_84, %c128_85], %27 {strides = array<i32>} : memref<14x224xf32, #tpu.memory_space<vmem>>, vector<8x32xf32>,
    %c1_86 = arith.constant 1 : index
    %c160_87 = arith.constant 160 : index
    %81 = vector.load %arg15[%c1_86, %c160_87] : memref<14x224xf32, #tpu.memory_space<vmem>>, vector<8x32xf32>
    tpu.vector_store %arg15[%c1_86, %c160_87], %27 {strides = array<i32>} : memref<14x224xf32, #tpu.memory_space<vmem>>, vector<8x32xf32>,
    %c0_88 = arith.constant 0 : index
    %c192_89 = arith.constant 192 : index
    %82 = vector.load %arg15[%c0_88, %c192_89] : memref<14x224xf32, #tpu.memory_space<vmem>>, vector<8x32xf32>
    tpu.vector_store %arg15[%c0_88, %c192_89], %27 {strides = array<i32>} : memref<14x224xf32, #tpu.memory_space<vmem>>, vector<8x32xf32>,
    %c3_90 = arith.constant 3 : index
    %c0_91 = arith.constant 0 : index
    %83 = vector.load %arg15[%c3_90, %c0_91] : memref<14x224xf32, #tpu.memory_space<vmem>>, vector<8x224xf32>
    %84 = arith.truncf %83 : vector<8x224xf32> to vector<8x224xbf16>
    %c0_92 = arith.constant 0 : index
    %c0_93 = arith.constant 0 : index
    %85 = vector.load %arg3[%c0_92, %c0_93] : memref<224x32xbf16, #tpu.memory_space<vmem>>, vector<224x32xbf16>
    %cst_94 = arith.constant dense<0.000000e+00> : vector<8x32xf32>
    %86 = tpu.matmul %84, %85, %cst_94 {dimension_numbers = #tpu.dot_dimension_numbers<[1], [0], [0], [1], [0, 0, 1, 1], [], []>} : vector<8x224xbf16>, vector<224x32xbf16>, vector<8x32xf32> -> vector<8x32xf32>
    %c1_95 = arith.constant 1 : index
    %c0_96 = arith.constant 0 : index
    %87 = vector.load %arg13[%c1_95, %c0_96] : memref<8x64xf32, #tpu.memory_space<vmem>>, vector<1x32xf32>
    %88 = vector.broadcast %87 : vector<1x32xf32> to vector<8x32xf32>
    %89 = arith.addf %86, %88 : vector<8x32xf32>
    %cst_97 = arith.constant 0.000000e+00 : f32
    %90 = vector.broadcast %cst_97 : f32 to vector<8x32xf32>
    %91 = arith.maximumf %89, %90 : vector<8x32xf32>
    %cst_98 = arith.constant 0.000000e+00 : f32
    %92 = vector.broadcast %cst_98 : f32 to vector<8x80xf32>
    %c0_99 = arith.constant 0 : index
    %c0_100 = arith.constant 0 : index
    %93 = vector.load %arg16[%c0_99, %c0_100] : memref<8x80xf32, #tpu.memory_space<vmem>>, vector<8x80xf32>
    tpu.vector_store %arg16[%c0_99, %c0_100], %92 {strides = array<i32>} : memref<8x80xf32, #tpu.memory_space<vmem>>, vector<8x80xf32>,
    %c4_101 = arith.constant 4 : index
    %c0_102 = arith.constant 0 : index
    %94 = vector.load %arg16[%c4_101, %c0_102] : memref<8x80xf32, #tpu.memory_space<vmem>>, vector<4x16xf32>
    tpu.vector_store %arg16[%c4_101, %c0_102], %51 {strides = array<i32>} : memref<8x80xf32, #tpu.memory_space<vmem>>, vector<4x16xf32>,
    %c3_103 = arith.constant 3 : index
    %c16_104 = arith.constant 16 : index
    %95 = vector.load %arg16[%c3_103, %c16_104] : memref<8x80xf32, #tpu.memory_space<vmem>>, vector<4x16xf32>
    tpu.vector_store %arg16[%c3_103, %c16_104], %51 {strides = array<i32>} : memref<8x80xf32, #tpu.memory_space<vmem>>, vector<4x16xf32>,
    %c2_105 = arith.constant 2 : index
    %c32_106 = arith.constant 32 : index
    %96 = vector.load %arg16[%c2_105, %c32_106] : memref<8x80xf32, #tpu.memory_space<vmem>>, vector<4x16xf32>
    tpu.vector_store %arg16[%c2_105, %c32_106], %51 {strides = array<i32>} : memref<8x80xf32, #tpu.memory_space<vmem>>, vector<4x16xf32>,
    %c1_107 = arith.constant 1 : index
    %c48_108 = arith.constant 48 : index
    %97 = vector.load %arg16[%c1_107, %c48_108] : memref<8x80xf32, #tpu.memory_space<vmem>>, vector<4x16xf32>
    tpu.vector_store %arg16[%c1_107, %c48_108], %51 {strides = array<i32>} : memref<8x80xf32, #tpu.memory_space<vmem>>, vector<4x16xf32>,
    %c0_109 = arith.constant 0 : index
    %c64_110 = arith.constant 64 : index
    %98 = vector.load %arg16[%c0_109, %c64_110] : memref<8x80xf32, #tpu.memory_space<vmem>>, vector<4x16xf32>
    tpu.vector_store %arg16[%c0_109, %c64_110], %51 {strides = array<i32>} : memref<8x80xf32, #tpu.memory_space<vmem>>, vector<4x16xf32>,
    %c2_111 = arith.constant 2 : index
    %c0_112 = arith.constant 0 : index
    %99 = vector.load %arg16[%c2_111, %c0_112] : memref<8x80xf32, #tpu.memory_space<vmem>>, vector<4x80xf32>
    %100 = arith.truncf %99 : vector<4x80xf32> to vector<4x80xbf16>
    %c0_113 = arith.constant 0 : index
    %c0_114 = arith.constant 0 : index
    %101 = vector.load %arg5[%c0_113, %c0_114] : memref<80x16xbf16, #tpu.memory_space<vmem>>, vector<80x16xbf16>
    %cst_115 = arith.constant dense<0.000000e+00> : vector<4x16xf32>
    %102 = tpu.matmul %100, %101, %cst_115 {dimension_numbers = #tpu.dot_dimension_numbers<[1], [0], [0], [1], [0, 0, 1, 1], [], []>} : vector<4x80xbf16>, vector<80x16xbf16>, vector<4x16xf32> -> vector<4x16xf32>
    %c3_116 = arith.constant 3 : index
    %c0_117 = arith.constant 0 : index
    %103 = vector.load %arg13[%c3_116, %c0_117] : memref<8x64xf32, #tpu.memory_space<vmem>>, vector<1x16xf32>
    %104 = vector.broadcast %103 : vector<1x16xf32> to vector<4x16xf32>
    %105 = arith.addf %102, %104 : vector<4x16xf32>
    %cst_118 = arith.constant 0.000000e+00 : f32
    %106 = vector.broadcast %cst_118 : f32 to vector<4x16xf32>
    %107 = arith.maximumf %105, %106 : vector<4x16xf32>
    %cst_119 = arith.constant 0.000000e+00 : f32
    %108 = vector.broadcast %cst_119 : f32 to vector<4x24xf32>
    %c0_120 = arith.constant 0 : index
    %c0_121 = arith.constant 0 : index
    %109 = vector.load %arg17[%c0_120, %c0_121] : memref<4x24xf32, #tpu.memory_space<vmem>>, vector<4x24xf32>
    tpu.vector_store %arg17[%c0_120, %c0_121], %108 {strides = array<i32>} : memref<4x24xf32, #tpu.memory_space<vmem>>, vector<4x24xf32>,
    %c2_122 = arith.constant 2 : index
    %c0_123 = arith.constant 0 : index
    %110 = vector.load %arg17[%c2_122, %c0_123] : memref<4x24xf32, #tpu.memory_space<vmem>>, vector<2x8xf32>
    tpu.vector_store %arg17[%c2_122, %c0_123], %73 {strides = array<i32>} : memref<4x24xf32, #tpu.memory_space<vmem>>, vector<2x8xf32>,
    %c1_124 = arith.constant 1 : index
    %c8_125 = arith.constant 8 : index
    %111 = vector.load %arg17[%c1_124, %c8_125] : memref<4x24xf32, #tpu.memory_space<vmem>>, vector<2x8xf32>
    tpu.vector_store %arg17[%c1_124, %c8_125], %73 {strides = array<i32>} : memref<4x24xf32, #tpu.memory_space<vmem>>, vector<2x8xf32>,
    %c0_126 = arith.constant 0 : index
    %c16_127 = arith.constant 16 : index
    %112 = vector.load %arg17[%c0_126, %c16_127] : memref<4x24xf32, #tpu.memory_space<vmem>>, vector<2x8xf32>
    tpu.vector_store %arg17[%c0_126, %c16_127], %73 {strides = array<i32>} : memref<4x24xf32, #tpu.memory_space<vmem>>, vector<2x8xf32>,
    %c1_128 = arith.constant 1 : index
    %c0_129 = arith.constant 0 : index
    %113 = vector.load %arg17[%c1_128, %c0_129] : memref<4x24xf32, #tpu.memory_space<vmem>>, vector<2x24xf32>
    %114 = arith.truncf %113 : vector<2x24xf32> to vector<2x24xbf16>
    %c0_130 = arith.constant 0 : index
    %c0_131 = arith.constant 0 : index
    %115 = vector.load %arg7[%c0_130, %c0_131] : memref<24x8xbf16, #tpu.memory_space<vmem>>, vector<24x8xbf16>
    %cst_132 = arith.constant dense<0.000000e+00> : vector<2x8xf32>
    %116 = tpu.matmul %114, %115, %cst_132 {dimension_numbers = #tpu.dot_dimension_numbers<[1], [0], [0], [1], [0, 0, 1, 1], [], []>} : vector<2x24xbf16>, vector<24x8xbf16>, vector<2x8xf32> -> vector<2x8xf32>
    %c5_133 = arith.constant 5 : index
    %c0_134 = arith.constant 0 : index
    %117 = vector.load %arg13[%c5_133, %c0_134] : memref<8x64xf32, #tpu.memory_space<vmem>>, vector<1x8xf32>
    %118 = vector.broadcast %117 : vector<1x8xf32> to vector<2x8xf32>
    %119 = arith.addf %116, %118 : vector<2x8xf32>
    %cst_135 = arith.constant 0.000000e+00 : f32
    %120 = vector.broadcast %cst_135 : f32 to vector<2x8xf32>
    %121 = arith.maximumf %119, %120 : vector<2x8xf32>
    %c3_136 = arith.constant 3 : index
    %c0_137 = arith.constant 0 : index
    %c0_138 = arith.constant 0 : index
    %122 = vector.load %arg11[%c3_136, %c0_137, %c0_138] : memref<6x16x16xbf16, #tpu.memory_space<vmem>>, vector<1x4x2xbf16>
    %123 = vector.shape_cast %122 : vector<1x4x2xbf16> to vector<4x2xbf16>
    %124 = arith.truncf %121 : vector<2x8xf32> to vector<2x8xbf16>
    %cst_139 = arith.constant dense<0.000000e+00> : vector<4x8xf32>
    %125 = tpu.matmul %123, %124, %cst_139 {dimension_numbers = #tpu.dot_dimension_numbers<[1], [0], [0], [1], [0, 0, 1, 1], [], []>} : vector<4x2xbf16>, vector<2x8xbf16>, vector<4x8xf32> -> vector<4x8xf32>
    %126 = arith.truncf %125 : vector<4x8xf32> to vector<4x8xbf16>
    %c3_140 = arith.constant 3 : index
    %c0_141 = arith.constant 0 : index
    %c0_142 = arith.constant 0 : index
    %127 = vector.load %arg12[%c3_140, %c0_141, %c0_142] : memref<6x64x64xbf16, #tpu.memory_space<vmem>>, vector<1x8x16xbf16>
    %128 = vector.shape_cast %127 : vector<1x8x16xbf16> to vector<8x16xbf16>
    %cst_143 = arith.constant dense<0.000000e+00> : vector<4x16xf32>
    %129 = tpu.matmul %126, %128, %cst_143 {dimension_numbers = #tpu.dot_dimension_numbers<[1], [0], [0], [1], [0, 0, 1, 1], [], []>} : vector<4x8xbf16>, vector<8x16xbf16>, vector<4x16xf32> -> vector<4x16xf32>
    %130 = arith.addf %129, %107 : vector<4x16xf32>
    %c4_144 = arith.constant 4 : index
    %c0_145 = arith.constant 0 : index
    %c0_146 = arith.constant 0 : index
    %131 = vector.load %arg11[%c4_144, %c0_145, %c0_146] : memref<6x16x16xbf16, #tpu.memory_space<vmem>>, vector<1x8x4xbf16>
    %132 = vector.shape_cast %131 : vector<1x8x4xbf16> to vector<8x4xbf16>
    %133 = arith.truncf %130 : vector<4x16xf32> to vector<4x16xbf16>
    %cst_147 = arith.constant dense<0.000000e+00> : vector<8x16xf32>
    %134 = tpu.matmul %132, %133, %cst_147 {dimension_numbers = #tpu.dot_dimension_numbers<[1], [0], [0], [1], [0, 0, 1, 1], [], []>} : vector<8x4xbf16>, vector<4x16xbf16>, vector<8x16xf32> -> vector<8x16xf32>
    %135 = arith.truncf %134 : vector<8x16xf32> to vector<8x16xbf16>
    %c4_148 = arith.constant 4 : index
    %c0_149 = arith.constant 0 : index
    %c0_150 = arith.constant 0 : index
    %136 = vector.load %arg12[%c4_148, %c0_149, %c0_150] : memref<6x64x64xbf16, #tpu.memory_space<vmem>>, vector<1x16x32xbf16>
    %137 = vector.shape_cast %136 : vector<1x16x32xbf16> to vector<16x32xbf16>
    %cst_151 = arith.constant dense<0.000000e+00> : vector<8x32xf32>
    %138 = tpu.matmul %135, %137, %cst_151 {dimension_numbers = #tpu.dot_dimension_numbers<[1], [0], [0], [1], [0, 0, 1, 1], [], []>} : vector<8x16xbf16>, vector<16x32xbf16>, vector<8x32xf32> -> vector<8x32xf32>
    %139 = arith.addf %138, %91 : vector<8x32xf32>
    %c5_152 = arith.constant 5 : index
    %c0_153 = arith.constant 0 : index
    %c0_154 = arith.constant 0 : index
    %140 = vector.load %arg11[%c5_152, %c0_153, %c0_154] : memref<6x16x16xbf16, #tpu.memory_space<vmem>>, vector<1x16x8xbf16>
    %141 = vector.shape_cast %140 : vector<1x16x8xbf16> to vector<16x8xbf16>
    %142 = arith.truncf %139 : vector<8x32xf32> to vector<8x32xbf16>
    %cst_155 = arith.constant dense<0.000000e+00> : vector<16x32xf32>
    %143 = tpu.matmul %141, %142, %cst_155 {dimension_numbers = #tpu.dot_dimension_numbers<[1], [0], [0], [1], [0, 0, 1, 1], [], []>} : vector<16x8xbf16>, vector<8x32xbf16>, vector<16x32xf32> -> vector<16x32xf32>
    %144 = arith.truncf %143 : vector<16x32xf32> to vector<16x32xbf16>
    %c5_156 = arith.constant 5 : index
    %c0_157 = arith.constant 0 : index
    %c0_158 = arith.constant 0 : index
    %145 = vector.load %arg12[%c5_156, %c0_157, %c0_158] : memref<6x64x64xbf16, #tpu.memory_space<vmem>>, vector<1x32x64xbf16>
    %146 = vector.shape_cast %145 : vector<1x32x64xbf16> to vector<32x64xbf16>
    %cst_159 = arith.constant dense<0.000000e+00> : vector<16x64xf32>
    %147 = tpu.matmul %144, %146, %cst_159 {dimension_numbers = #tpu.dot_dimension_numbers<[1], [0], [0], [1], [0, 0, 1, 1], [], []>} : vector<16x32xbf16>, vector<32x64xbf16>, vector<16x64xf32> -> vector<16x64xf32>
    %148 = arith.truncf %1 : vector<16x64xf32> to vector<16x64xbf16>
    %c0_160 = arith.constant 0 : index
    %c0_161 = arith.constant 0 : index
    %149 = vector.load %arg8[%c0_160, %c0_161] : memref<64x64xbf16, #tpu.memory_space<vmem>>, vector<64x64xbf16>
    %cst_162 = arith.constant dense<0.000000e+00> : vector<16x64xf32>
    %150 = tpu.matmul %148, %149, %cst_162 {dimension_numbers = #tpu.dot_dimension_numbers<[1], [0], [0], [1], [0, 0, 1, 1], [], []>} : vector<16x64xbf16>, vector<64x64xbf16>, vector<16x64xf32> -> vector<16x64xf32>
    %c6_163 = arith.constant 6 : index
    %c0_164 = arith.constant 0 : index
    %151 = vector.load %arg13[%c6_163, %c0_164] : memref<8x64xf32, #tpu.memory_space<vmem>>, vector<1x64xf32>
    %152 = vector.broadcast %151 : vector<1x64xf32> to vector<16x64xf32>
    %153 = arith.addf %150, %152 : vector<16x64xf32>
    %cst_165 = arith.constant 0.000000e+00 : f32
    %154 = vector.broadcast %cst_165 : f32 to vector<16x64xf32>
    %155 = arith.maximumf %153, %154 : vector<16x64xf32>
    %cst_166 = arith.constant dense<0.000000e+00> : vector<64xf32>
    %156 = vector.multi_reduction <add>, %1, %cst_166 [0] : vector<16x64xf32> to vector<64xf32>
    %157 = vector.shape_cast %156 : vector<64xf32> to vector<1x64xf32>
    %158 = arith.truncf %157 : vector<1x64xf32> to vector<1x64xbf16>
    %c0_167 = arith.constant 0 : index
    %c0_168 = arith.constant 0 : index
    %159 = vector.load %arg9[%c0_167, %c0_168] : memref<64x4xbf16, #tpu.memory_space<vmem>>, vector<64x4xbf16>
    %cst_169 = arith.constant dense<0.000000e+00> : vector<1x4xf32>
    %160 = tpu.matmul %158, %159, %cst_169 {dimension_numbers = #tpu.dot_dimension_numbers<[1], [0], [0], [1], [0, 0, 1, 1], [], []>} : vector<1x64xbf16>, vector<64x4xbf16>, vector<1x4xf32> -> vector<1x4xf32>
    %161 = arith.truncf %160 : vector<1x4xf32> to vector<1x4xbf16>
    %c0_170 = arith.constant 0 : index
    %c0_171 = arith.constant 0 : index
    %162 = vector.load %arg10[%c0_170, %c0_171] : memref<4x64xbf16, #tpu.memory_space<vmem>>, vector<4x64xbf16>
    %cst_172 = arith.constant dense<0.000000e+00> : vector<1x64xf32>
    %163 = tpu.matmul %161, %162, %cst_172 {dimension_numbers = #tpu.dot_dimension_numbers<[1], [0], [0], [1], [0, 0, 1, 1], [], []>} : vector<1x4xbf16>, vector<4x64xbf16>, vector<1x64xf32> -> vector<1x64xf32>
    %c7 = arith.constant 7 : index
    %c0_173 = arith.constant 0 : index
    %164 = vector.load %arg13[%c7, %c0_173] : memref<8x64xf32, #tpu.memory_space<vmem>>, vector<1x64xf32>
    %165 = arith.addf %163, %164 : vector<1x64xf32>
    %cst_174 = arith.constant 0.000000e+00 : f32
    %166 = vector.broadcast %cst_174 : f32 to vector<1x64xf32>
    %167 = arith.maximumf %165, %166 : vector<1x64xf32>
    %168 = arith.mulf %147, %155 : vector<16x64xf32>
    %169 = vector.broadcast %167 : vector<1x64xf32> to vector<16x64xf32>
    %170 = arith.addf %168, %169 : vector<16x64xf32>
    %c0_175 = arith.constant 0 : index
    %c0_176 = arith.constant 0 : index
    %c0_177 = arith.constant 0 : index
    %171 = vector.load %arg14[%c0_175, %c0_176, %c0_177] : memref<1x16x64xf32, #tpu.memory_space<vmem>>, vector<1x16x64xf32>
    %172 = vector.shape_cast %171 : vector<1x16x64xf32> to vector<16x64xf32>
    %173 = vector.shape_cast %170 : vector<16x64xf32> to vector<1x16x64xf32>
    tpu.vector_store %arg14[%c0_175, %c0_176, %c0_177], %173 {strides = array<i32>} : memref<1x16x64xf32, #tpu.memory_space<vmem>>, vector<1x16x64xf32>,
    return
  }
  func.func @transform_0(%arg0: i32) -> (i32, i32, i32) {
    %c0_i32 = arith.constant 0 : i32
    %c0_i32_0 = arith.constant 0 : i32
    %c0_i32_1 = arith.constant 0 : i32
    return %arg0, %c0_i32, %c0_i32_0 : i32, i32, i32
  }
  func.func @transform_1(%arg0: i32) -> (i32, i32) {
    %c0_i32 = arith.constant 0 : i32
    %c0_i32_0 = arith.constant 0 : i32
    %c0_i32_1 = arith.constant 0 : i32
    return %c0_i32, %c0_i32_0 : i32, i32
  }
  func.func @transform_2(%arg0: i32) -> (i32, i32) {
    %c0_i32 = arith.constant 0 : i32
    %c0_i32_0 = arith.constant 0 : i32
    %c0_i32_1 = arith.constant 0 : i32
    return %c0_i32, %c0_i32_0 : i32, i32
  }
  func.func @transform_3(%arg0: i32) -> (i32, i32) {
    %c0_i32 = arith.constant 0 : i32
    %c0_i32_0 = arith.constant 0 : i32
    %c0_i32_1 = arith.constant 0 : i32
    return %c0_i32, %c0_i32_0 : i32, i32
  }
  func.func @transform_4(%arg0: i32) -> (i32, i32) {
    %c0_i32 = arith.constant 0 : i32
    %c0_i32_0 = arith.constant 0 : i32
    %c0_i32_1 = arith.constant 0 : i32
    return %c0_i32, %c0_i32_0 : i32, i32
  }
  func.func @transform_5(%arg0: i32) -> (i32, i32) {
    %c0_i32 = arith.constant 0 : i32
    %c0_i32_0 = arith.constant 0 : i32
    %c0_i32_1 = arith.constant 0 : i32
    return %c0_i32, %c0_i32_0 : i32, i32
  }
  func.func @transform_6(%arg0: i32) -> (i32, i32) {
    %c0_i32 = arith.constant 0 : i32
    %c0_i32_0 = arith.constant 0 : i32
    %c0_i32_1 = arith.constant 0 : i32
    return %c0_i32, %c0_i32_0 : i32, i32
  }
  func.func @transform_7(%arg0: i32) -> (i32, i32) {
    %c0_i32 = arith.constant 0 : i32
    %c0_i32_0 = arith.constant 0 : i32
    %c0_i32_1 = arith.constant 0 : i32
    return %c0_i32, %c0_i32_0 : i32, i32
  }
  func.func @transform_8(%arg0: i32) -> (i32, i32) {
    %c0_i32 = arith.constant 0 : i32
    %c0_i32_0 = arith.constant 0 : i32
    %c0_i32_1 = arith.constant 0 : i32
    return %c0_i32, %c0_i32_0 : i32, i32
  }
  func.func @transform_9(%arg0: i32) -> (i32, i32) {
    %c0_i32 = arith.constant 0 : i32
    %c0_i32_0 = arith.constant 0 : i32
    %c0_i32_1 = arith.constant 0 : i32
    return %c0_i32, %c0_i32_0 : i32, i32
  }
  func.func @transform_10(%arg0: i32) -> (i32, i32, i32) {
    %c0_i32 = arith.constant 0 : i32
    %c0_i32_0 = arith.constant 0 : i32
    %c0_i32_1 = arith.constant 0 : i32
    %c0_i32_2 = arith.constant 0 : i32
    return %c0_i32, %c0_i32_0, %c0_i32_1 : i32, i32, i32
  }
  func.func @transform_11(%arg0: i32) -> (i32, i32, i32) {
    %c0_i32 = arith.constant 0 : i32
    %c0_i32_0 = arith.constant 0 : i32
    %c0_i32_1 = arith.constant 0 : i32
    %c0_i32_2 = arith.constant 0 : i32
    return %c0_i32, %c0_i32_0, %c0_i32_1 : i32, i32, i32
  }
  func.func @transform_12(%arg0: i32) -> (i32, i32) {
    %c0_i32 = arith.constant 0 : i32
    %c0_i32_0 = arith.constant 0 : i32
    %c0_i32_1 = arith.constant 0 : i32
    return %c0_i32, %c0_i32_0 : i32, i32
  }
  func.func @transform_13(%arg0: i32) -> (i32, i32, i32) {
    %c0_i32 = arith.constant 0 : i32
    %c0_i32_0 = arith.constant 0 : i32
    %c0_i32_1 = arith.constant 0 : i32
    return %arg0, %c0_i32, %c0_i32_0 : i32, i32, i32
  }
}

</mosaic_0001>

<bundles_post_ra>
// kernel: tpu_custom_call.1
= control target key start
LH: loop header
LB: loop body
LE: loop exit
PB: predicated region body
PF: predicated region fallthrough
CT: control target
= control target key end

     0   :  { %s3424_s0 = inlined_call_operand.vmem [shape: f32[2,16,64], index: 0, kind: input, shape index: {}]   ;;  %s3425_s1 = inlined_call_operand.vmem [shape: bf16[224,32], index: 1, kind: input, shape index: {}]   ;;  %s3426_s2 = inlined_call_operand.vmem [shape: bf16[224,32], index: 2, kind: input, shape index: {}]   ;;  %s3427_s3 = inlined_call_operand.vmem [shape: bf16[80,16], index: 3, kind: input, shape index: {}]   ;;  %s3428_s4 = inlined_call_operand.vmem [shape: bf16[80,16], index: 4, kind: input, shape index: {}]   ;;  %s3429_s5 = inlined_call_operand.vmem [shape: bf16[24,8], index: 5, kind: input, shape index: {}]   ;;  %s3430_s6 = inlined_call_operand.vmem [shape: bf16[24,8], index: 6, kind: input, shape index: {}]   ;;  %s3431_s7 = inlined_call_operand.vmem [shape: bf16[64,64], index: 7, kind: input, shape index: {}]   ;;  %s3432_s8 = inlined_call_operand.vmem [shape: bf16[64,4], index: 8, kind: input, shape index: {}]   ;;  %s3433_s9 = inlined_call_operand.vmem [shape: bf16[4,64], index: 9, kind: input, shape index: {}]   ;;  %s3434_s10 = inlined_call_operand.vmem [shape: bf16[6,16,16], index: 10, kind: input, shape index: {}]   ;;  %s3435_s11 = inlined_call_operand.vmem [shape: bf16[6,64,64], index: 11, kind: input, shape index: {}]   ;;  %s3436_s12 = inlined_call_operand.vmem [shape: f32[8,64], index: 12, kind: input, shape index: {}]   ;;  %s3437_s13 = inlined_call_operand.hbm [shape: f32[2,16,64], index: 13, kind: output, shape index: {}]  }
   0x1   :  { %3458 = sst [smem:[#allocation9_spill]] %s3424_s0 }
   0x2   :  { %3459 = sst [smem:[#allocation10_spill]] %s3425_s1 }
   0x3   :  { %18 = vsyncpa [#allocation6], 0 }
   0x4   :  { %20 = vsyncpa [#allocation6 + $0x1], 0  ;;  %s2848_s25 = smov 0   ;;  %s2850_s26 = smov 0  }
   0x5   :  { %s2852_s27 = smov 0   ;;  %s2854_s28 = smov 0  }
   0x6 LB: > { %s2869_s29 = sadd.s32 4294967295, %s2765_s28   ;;  %s2256_s30 = sadd.s32 4294967294, %s2765_s28   ;;  %s2765_s28 = sphi %s2854_s28, %s3493_s28   ;;  %s2761_s27 = sphi %s2852_s27, %s3492_s27   ;;  %s2757_s26 = sphi %s2850_s26, %s3491_s26   ;;  %s2753_s25 = sphi %s2848_s25, %s3490_s25  }
   0x7   : > { %s2873_s14 = sadd.s32 1, %s2765_s28   ;;  %s311_s15 = sadd.s32 1, %s2761_s27 }
   0x8   : > { %s308_s16 = ssub.s32 %s2765_s28, %s2873_s14  ;;  %p321_p0 = scmp.ne.s32.totalorder %s2761_s27, %s2757_s26 }
   0x9   : > { %p309_p1 = scmp.eq.s32.totalorder %s308_s16, 0  ;;  %p322_p2 = scmp.eq.s32.totalorder %s2869_s29, 1 }
   0xa   : > { %p327_p3 = scmp.ne.s32.totalorder %s2757_s26, %s2753_s25  ;;  %p328_p4 = scmp.eq.s32.totalorder %s2256_s30, 1 }
   0xb   : > { %s2884_s17 = scalar_select %p309_p1, %s2761_s27, %s311_s15  }
   0xc   : > { %p2886_p5 = por %p322_p2, %p321_p0  ;;  %p2890_p6 = por %p328_p4, %p327_p3 }
   0xd   : > { %3460 = sst [smem:[#allocation8_spill]] %s2884_s17  ;;  %p2259_p7 = scmp.ge.s32.totalorder %s2765_s28, 1 }
   0xe   : > { %p390_p8 = scmp.lt.s32.totalorder %s2765_s28, 3 }
  0x10   : > { %p391_p9 = pnand %p2259_p7, %p390_p8 }
  0x11   : > { %p434_p10 = scmp.lt.s32.totalorder (!%p391_p9), %s2869_s29, 1  ;;  %v2767_v0 = vmov (!%p391_p9), 0.0   ;;  %vm2768_vm0 = vmmov (!%p391_p9), 0   ;;  %v2642_v1 = vld [vmem:[%s3435_s11] sm:$0xff] (!%p391_p9)   ;;  %v2643_v2 = vld [vmem:[%s3435_s11 + $0x8] sm:$0xff] (!%p391_p9)   ;;  %s3463_s0 = sld [smem:[#allocation9_spill]] (!%p391_p9) }
  0x12   : > { %394 = sbr.rel (%p391_p9) target bundleno = 4269 (0x10ad), region = 72  ;;  %2437 = vmatprep.subr.bf16.mxu0 (!%p391_p9), %v2767_v0  ;;  %565 = vst [vmem:[#allocation2] sm:$0xff] (!%p391_p9), %v2767_v0  ;;  %568 = vst [vmem:[#allocation2 + $0x10] sm:$0x3f] (!%p391_p9), %v2767_v0  ;;  %2439 = vmatprep.mubr.msk.bf16.mxu0 (!%p391_p9), %vm2768_vm0, %v2767_v0  ;;  %v2644_v3 = vld [vmem:[%s3435_s11 + $0x10] sm:$0xff] (!%p391_p9)   ;;  %vm3438_vm1 = vcmask (!%p391_p9), 523264  }
  0x13   : > { %2443 = vmatprep.subr.bf16.mxu1 (!%p391_p9), %v2767_v0  ;;  %2451 = vmatprep.mubr.msk.bf16.mxu1 (!%p391_p9), %vm2768_vm0, %v2767_v0  ;;  %vm3439_vm2 = vcmask (!%p391_p9), 130048   ;;  %v442_v9 = vld [vmem:[%s3434_s10] sm:$0xf] (!%p391_p9)  ;;  %v2645_v11 = vld [vmem:[%s3435_s11 + $0x18] sm:$0xff] (!%p391_p9)   ;;  %vm3440_vm3 = vcmask (!%p391_p9), 785408   ;;  %vm569_vm4 = vcmask (!%p391_p9), 783360  }
  0x14   : > { %2444 = vmatpush3.bf16.msra.mxu1 (!%p391_p9), %v2642_v1  ;;  %567 = vst.msk [vmem:[#allocation2 + $0x8] sm:$0xff] (!%p391_p9), %vm3440_vm3, %v2767_v0  ;;  %s3464_s1 = sld [smem:[#allocation10_spill]] (!%p391_p9)  ;;  %v2769_v18 = vmov (!%p391_p9), 0   ;;  %vm574_vm5 = vcmask (!%p391_p9), 261126   ;;  %vm576_vm6 = vcmask (!%p391_p9), 259072   ;;  %vm604_vm7 = vcmask (!%p391_p9), 261122  }
  0x15   : > { %2445 = vmatprep.subr.bf16.mxu1 (!%p391_p9), %v2767_v0  ;;  %570 = vst.msk [vmem:[#allocation2 + $0x18] sm:$0x3f] (!%p391_p9), %vm569_vm4, %v2767_v0  ;;  %vm606_vm8 = vcmask (!%p391_p9), 254976   ;;  %s3442_s23 = smov (!%p391_p9), 64   ;;  %s3441_s20 = smov (!%p391_p9), 96   ;;  %vm582_vm9 = vcmask (!%p391_p9), 523525  }
  0x16   : > { %vm584_vm10 = vcmask (!%p391_p9), 520448   ;;  %vm3451_vm11 = vcmask (!%p391_p9), 785924   ;;  %vm3448_vm12 = vcmask (!%p391_p9), 781824   ;;  %vm612_vm13 = vcmask (!%p391_p9), 523521   ;;  %v2269_v63 = vld [vmem:[%s3436_s12] ss:$0 sm:$0xff] (!%p391_p9) }
  0x17   : > { %vm614_vm14 = vcmask (!%p391_p9), 516352   ;;  %vm3452_vm15 = vcmask (!%p391_p9), 785920   ;;  %s3457_s15 = smov (!%p391_p9), 16   ;;  %s3455_s16 = smov (!%p391_p9), 8  }
  0x18   : > { %2446 = vmatpush3.bf16.msra.mxu1 (!%p391_p9), %v2643_v2 }
  0x19   : > { %s435_s22 = scalar_select %p434_p10, %s2869_s29, 1  ;;  %2447 = vmatprep.subr.bf16.mxu1 %v2767_v0 }
  0x1a   : > { %v2646_v17 = vld [vmem:[%s3464_s1] sm:$0xff]   ;;  %v2647_v19 = vld [vmem:[%s3464_s1 + $0x8] sm:$0xff]   ;;  %v2648_v20 = vld [vmem:[%s3464_s1 + $0x10] sm:$0xff]  }
  0x1b   : > { %s2376_s30 = sshll.u32 %s435_s22, 4  ;;  %v2649_v21 = vld [vmem:[%s3464_s1 + $0x18] sm:$0xff]   ;;  %v2650_v22 = vld [vmem:[%s3464_s1 + $0x20] sm:$0xff]   ;;  %v2651_v23 = vld [vmem:[%s3464_s1 + $0x28] sm:$0xff]   ;;  %s3467_s22 = smov 16  }
  0x1c   : > { %s438_s17 = scalar_lea.vmem %s3463_s0, %s2376_s30  ;;  %2448 = vmatpush3.bf16.msra.mxu1 %v2644_v3  ;;  %v2652_v24 = vld [vmem:[%s3464_s1 + $0x30] sm:$0xff]   ;;  %v2653_v25 = vld [vmem:[%s3464_s1 + $0x38] sm:$0xff]   ;;  %v2654_v26 = vld [vmem:[%s3464_s1 + $0x40] sm:$0xff]   ;;  %s2776_s0 = smov [#allocation5]  }
  0x1d   : > { %v440_v4 = vld [vmem:[%s438_s17] sm:$0xff]  ;;  %v441_v5 = vld [vmem:[%s438_s17 + $0x8] sm:$0xff]  ;;  %2449 = vmatprep.subr.bf16.mxu1 %v2767_v0  ;;  %v2656_v28 = vld [vmem:[%s3464_s1 + $0x50] sm:$0xff]   ;;  %s3453_s17 = smov 32  }
  0x1e   : > { %v2919_v6 = vpack.c.bf16 %v441_v5, %v440_v4  ;;  %v2035_v7 = vsel %vm3438_vm1, %v440_v4, 0.0  ;;  %v2036_v8 = vsel %vm3438_vm1, %v441_v5, 0.0  ;;  %v2655_v27 = vld [vmem:[%s3464_s1 + $0x48] sm:$0xff]   ;;  %v2657_v36 = vld [vmem:[%s3464_s1 + $0x58] sm:$0xff]   ;;  %v2658_v39 = vld [vmem:[%s3464_s1 + $0x60] sm:$0xff]  }
  0x1f   : > { %v2926_v10 = vadd.f32 %v2036_v8, %v2035_v7  ;;  %v2659_v40 = vld [vmem:[%s3464_s1 + $0x68] sm:$0xff]  }
  0x20   : > { %2438 = vmatpush3.bf16.msra.mxu0 %v2919_v6  ;;  %2450 = vmatpush3.bf16.msra.mxu1 %v2645_v11 }
  0x21   : > { %2455 = vmatprep.subr.bf16.mxu1 %v2767_v0  ;;  %764 = vmatprep.subr.bf16.mxu0 %v2769_v18 }
  0x23   : > { %2440 = vmatmul.mubr.msk.bf16.vlgmr.msra.gmra.mrb[0].mxu0 %vm3439_vm2, %v442_v9  ;;  %vm3446_vm2 = vcmask 1043200  }
  0x24   : > { %765 = vmatpush1.bf16.msra.mxu0 %v2646_v17 }
  0x25   : > { %766 = vmatprep.subr.bf16.mxu0 %v2769_v18 }
  0x28   : > { %767 = vmatpush1.bf16.msra.mxu0 %v2647_v19 }
  0x29   : > { %768 = vmatprep.subr.bf16.mxu0 %v2769_v18 }
  0x2c   : > { %769 = vmatpush1.bf16.msra.mxu0 %v2648_v20 }
  0x2d   : > { %770 = vmatprep.subr.bf16.mxu0 %v2769_v18 }
  0x30   : > { %771 = vmatpush1.bf16.msra.mxu0 %v2649_v21 }
  0x31   : > { %772 = vmatprep.subr.bf16.mxu0 %v2769_v18 }
  0x34   : > { %773 = vmatpush1.bf16.msra.mxu0 %v2650_v22  ;;  %v2662_v22 = vld [vmem:[%s3427_s3] sm:$0xff]  }
  0x35   : > { %774 = vmatprep.subr.bf16.mxu0 %v2769_v18 }
  0x38   : > { %775 = vmatpush1.bf16.msra.mxu0 %v2651_v23  ;;  %v2663_v23 = vld [vmem:[%s3427_s3 + $0x8] sm:$0xff]  }
  0x39   : > { %776 = vmatprep.subr.bf16.mxu0 %v2769_v18 }
  0x3c   : > { %777 = vmatpush1.bf16.msra.mxu0 %v2652_v24  ;;  %v2664_v24 = vld [vmem:[%s3427_s3 + $0x10] sm:$0xff]  }
  0x3d   : > { %778 = vmatprep.subr.bf16.mxu0 %v2769_v18 }
  0x40   : > { %779 = vmatpush1.bf16.msra.mxu0 %v2653_v25  ;;  %v2665_v25 = vld [vmem:[%s3427_s3 + $0x18] sm:$0xff]  }
  0x41   : > { %780 = vmatprep.subr.bf16.mxu0 %v2769_v18 }
  0x44   : > { %781 = vmatpush1.bf16.msra.mxu0 %v2654_v26  ;;  %v2666_v26 = vld [vmem:[%s3427_s3 + $0x20] sm:$0xff]  }
  0x45   : > { %782 = vmatprep.subr.bf16.mxu0 %v2769_v18 }
  0x48   : > { %783 = vmatpush1.bf16.msra.mxu0 %v2655_v27 }
  0x49   : > { %784 = vmatprep.subr.bf16.mxu0 %v2769_v18 }
  0x4c   : > { %785 = vmatpush1.bf16.msra.mxu0 %v2656_v28 }
  0x4d   : > { %786 = vmatprep.subr.bf16.mxu0 %v2769_v18 }
  0x50   : > { %787 = vmatpush1.bf16.msra.mxu0 %v2657_v36 }
  0x51   : > { %788 = vmatprep.subr.bf16.mxu0 %v2769_v18 }
  0x54   : > { %789 = vmatpush1.bf16.msra.mxu0 %v2658_v39 }
  0x55   : > { %790 = vmatprep.subr.bf16.mxu0 %v2769_v18 }
  0x58   : > { %791 = vmatpush1.bf16.msra.mxu0 %v2659_v40 }
  0x59   : > { %2489 = vmatprep.subr.bf16.mxu0 %v2767_v0 }
  0xf6   : > { %v482_v12 = vpop.f32.mrb[0].mxu0 }
  0xf7   : > { %v488_v13 = vpack.c.bf16 %v482_v12, %v482_v12  ;;  %v2441_v14 = vpop.f32.mrb[1].mxu0 }
  0xf8   : > { %v485_v15 = vpop.f32.mrb[2].mxu0  ;;  %v2660_v14 = vld [vmem:[%s3435_s11 + $0x20] sm:$0xff]  }
  0xf9   : > { %v2442_v16 = vpop.f32.mrb[3].mxu0  ;;  %2452 = vmatmul.mubr.msk.bf16.vlgmr.msra.gmra.mrb[0].mxu1 %vm3438_vm1, %v488_v13  ;;  %vm3447_vm1 = vcmask 1048323   ;;  %v2285_v13 = vld [vmem:[%s3434_s10 + $0x8] sm:$0x3] }
  0xfa   : > { %2457 = vmatprep.mubr.msk.bf16.mxu1 %vm2768_vm0, %v2767_v0  ;;  %v2661_v15 = vld [vmem:[%s3435_s11 + $0x28] sm:$0xff]  }
 0x1cc   : > { %v559_v29 = vpop.f32.mrb[0].mxu1 }
 0x1cd   : > { %v2453_v30 = vpop.f32.mrb[1].mxu1  ;;  %v586_v31 = vrot.slane %v559_v29, 4  ;;  %v578_v32 = vrot.slane %v559_v29, 3  ;;  %v572_v34 = vrot.slane %v559_v29, 2  ;;  %v602_v35 = vrot.slane %v559_v29, 6 }
 0x1ce   : > { %v562_v33 = vpop.f32.mrb[2].mxu1  ;;  %v608_v38 = vrot.slane %v559_v29, 7  ;;  %v594_v41 = vrot.slane %v559_v29, 5 }
 0x1cf   : > { %587 = vrot.lane.b32.xlu1 %v586_v31, %s3442_s23  ;;  %579 = vrot.lane.b32.xlu0 %v578_v32, %s3453_s17  ;;  %v2454_v37 = vpop.f32.mrb[3].mxu1  ;;  %575 = vst.msk [vmem:[#allocation2] sm:$0xc0] %vm574_vm5, %v572_v34 }
 0x1d0   : > { %577 = vst.msk [vmem:[#allocation2 + $0x10] sm:$0x3f] %vm576_vm6, %v572_v34  ;;  %v2294_v37 = vld [vmem:[%s3436_s12 + $0x2] ss:$0 sm:$0xff] }
 0x1d1   : > { %605 = vst.msk [vmem:[#allocation2 + $0x8] sm:$0xfc] %vm604_vm7, %v602_v35 }
 0x1d2   : > { %607 = vst.msk [vmem:[#allocation2 + $0x18] sm:$0x3] %vm606_vm8, %v602_v35 }
 0x1d3   : > { %616 = vrot.lane.b32.xlu1 %v559_v29, %s3442_s23  ;;  %609 = vrot.lane.b32.xlu0 %v608_v38, %s3453_s17  ;;  %s3465_s23 = smov 64  }
 0x1d7   : > { %595 = vrot.lane.b32.xlu0 %v594_v41, %s3441_s20  ;;  %s2774_s20 = smov 48  }
 0x241   : > { %v588_v42 = vpop.permute.xlu1 %587  ;;  %v580_v43 = vpop.permute.xlu0 %579 }
 0x242   : > { %583 = vst.msk [vmem:[#allocation2] sm:$0xe0] %vm582_vm9, %v580_v43 }
 0x243   : > { %585 = vst.msk [vmem:[#allocation2 + $0x10] sm:$0x1f] %vm584_vm10, %v580_v43 }
 0x244   : > { %591 = vst.msk [vmem:[#allocation2] sm:$0xf0] %vm3451_vm11, %v588_v42  ;;  %vm1151_vm11 = vcmask 189568  }
 0x245   : > { %593 = vst.msk [vmem:[#allocation2 + $0x10] sm:$0xf] %vm3448_vm12, %v588_v42  ;;  %v617_v44 = vpop.permute.xlu1 %616  ;;  %v610_v45 = vpop.permute.xlu0 %609  ;;  %vm3450_vm12 = vcmask 31744  }
 0x246   : > { %613 = vst.msk [vmem:[#allocation2 + $0x8] sm:$0xfe] %vm612_vm13, %v610_v45 }
 0x247   : > { %615 = vst.msk [vmem:[#allocation2 + $0x18] sm:$0x1] %vm614_vm14, %v610_v45 }
 0x248   : > { %620 = vst.msk [vmem:[#allocation2 + $0x8] sm:$0xff] %vm3452_vm15, %v617_v44  ;;  %vm1172_vm15 = vcmask 195584  }
 0x249   : > { %v596_v46 = vpop.permute.xlu0 %595 }
 0x24a   : > { %599 = vst.msk [vmem:[#allocation2] sm:$0xf8] %vm3447_vm1, %v596_v46  ;;  %vm3449_vm1 = vcmask 1041408  }
 0x24b   : > { %601 = vst.msk [vmem:[#allocation2 + $0x10] sm:$0x7] %vm3446_vm2, %v596_v46  ;;  %vm941_vm2 = vcmask 650752   ;;  %v2301_v46 = vld [vmem:[%s3434_s10 + $0x10] sm:$0x1] }
 0x24e   : > { %v624_v47 = vld [vmem:[#allocation2 + $0x18] sm:$0x7] }
 0x24f   : > { %v622_v48 = vld [vmem:[#allocation2 + $0x8] sm:$0xf8]  ;;  %1223 = vst.msk [vmem:[#allocation2 + $0x18] sm:$0x3f] %vm569_vm4, %v2767_v0  ;;  %vm812_vm4 = vcmask 1043456  }
 0x250   : > { %1221 = vst.msk [vmem:[#allocation2 + $0x8] sm:$0xff] %vm3440_vm3, %v2767_v0  ;;  %v626_v49 = vpack.c.bf16 %v624_v47, %v622_v48  ;;  %v2667_v47 = vld [vmem:[%s3435_s11 + $0x40] sm:$0xff]  }
 0x251   : > { %v621_v50 = vld [vmem:[#allocation2] sm:$0xf8] }
 0x252   : > { %v623_v51 = vld [vmem:[#allocation2 + $0x10] sm:$0x7]  ;;  %v669_v52 = vshrl.u32 %v626_v49, 16  ;;  %v672_v53 = vshll.u32 %v626_v49, 16  ;;  %1220 = vst [vmem:[#allocation2] sm:$0xff] %v2767_v0 }
 0x253   : > { %1222 = vst [vmem:[#allocation2 + $0x10] sm:$0x3f] %v2767_v0  ;;  %v625_v54 = vpack.c.bf16 %v623_v51, %v621_v50 }
 0x254   : > { %v671_v55 = vrot.slane %v669_v52, 1  ;;  %v674_v56 = vrot.slane %v672_v53, 2  ;;  %v2668_v53 = vld [vmem:[%s3429_s5] sm:$0xff]  }
 0x255   : > { %v661_v57 = vshrl.u32 %v625_v54, 16  ;;  %v664_v58 = vshll.u32 %v625_v54, 16  ;;  %v2669_v54 = vld [vmem:[%s3429_s5 + $0x8] ss:$0 sps:$4 sm:$0xff]  }
 0x256   : > { %v675_v59 = vor.u32 %v674_v56, %v671_v55  ;;  %v1177_v55 = vsel %vm812_vm4, %v2669_v54, 0 }
 0x257   : > { %v663_v60 = vrot.slane %v661_v57, 1  ;;  %v666_v61 = vrot.slane %v664_v58, 2 }
 0x258   : > { %2284 = vmatprep.mubr.msk.bf16.mxu0 %vm3440_vm3, %v675_v59  ;;  %vm3445_vm3 = vcmask 64512  }
 0x259   : > { %v667_v62 = vor.u32 %v666_v61, %v663_v60 }
 0x25b   : > { %797 = vmatmul.mubr.bf16.vlgmr.msra.gmra.mrb[4].mxu0 %v667_v62 }
 0x25c   : > { %2491 = vmatprep.mubr.msk.bf16.mxu0 %vm2768_vm0, %v2767_v0  ;;  %2490 = vmatpush3.bf16.msra.mxu0 %v2667_v47 }
 0x25d   : > { %1404 = vmatprep.subr.bf16.mxu0 %v2769_v18 }
 0x32e   : > { %v798_v1 = vpop.f32.mrb[4].mxu0 }
 0x32f   : > { %v799_v2 = vadd.f32 %v2269_v63, %v798_v1  ;;  %v800_v3 = vpop.f32.mrb[5].mxu0 }
 0x330   : > { %v801_v4 = vpop.f32.mrb[6].mxu0 }
 0x331   : > { %v3030_v5 = vmax.f32 %v799_v2, 0.0  ;;  %v802_v7 = vpop.f32.mrb[7].mxu0  ;;  %v2670_v4 = vld [vmem:[%s3428_s4] sm:$0xff]  }
 0x333   : > { %v807_v8 = vpack.c.bf16 %v3030_v5, %v3030_v5  ;;  %v1247_v9 = vrot.slane %v3030_v5, 6  ;;  %v1225_v11 = vrot.slane %v3030_v5, 2 }
 0x335   : > { %v814_v12 = vsel %vm812_vm4, %v807_v8, 0  ;;  %1249 = vst.msk [vmem:[#allocation2 + $0x8] sm:$0xfc] %vm604_vm7, %v1247_v9  ;;  %vm920_vm7 = vcmask 125952   ;;  %v2671_v8 = vld [vmem:[%s3428_s4 + $0x8] sm:$0xff]  }
 0x336   : > { %2456 = vmatpush3.bf16.msra.mxu1 %v814_v12  ;;  %1250 = vst.msk [vmem:[#allocation2 + $0x18] sm:$0x3] %vm606_vm8, %v1247_v9  ;;  %vm926_vm8 = vcmask 257152   ;;  %v2672_v9 = vld [vmem:[%s3428_s4 + $0x10] sm:$0xff]   ;;  %v2674_v12 = vld [vmem:[%s3428_s4 + $0x20] sm:$0xff]  }
 0x337   : > { %1227 = vst.msk [vmem:[#allocation2] sm:$0xc0] %vm574_vm5, %v1225_v11  ;;  %2461 = vmatprep.subr.bf16.mxu1 %v2767_v0  ;;  %vm3444_vm5 = vcmask 261120  }
 0x338   : > { %1228 = vst.msk [vmem:[#allocation2 + $0x10] sm:$0x3f] %vm576_vm6, %v1225_v11  ;;  %vm918_vm6 = vcmask 654336   ;;  %v2673_v11 = vld [vmem:[%s3428_s4 + $0x18] sm:$0xff]  }
 0x339   : > { %2458 = vmatmul.mubr.msk.bf16.vlgmr.msra.gmra.mrb[4].mxu1 %vm3445_vm3, %v2285_v13  ;;  %919 = vst.msk [vmem:[#allocation3] sm:$0xff] %vm918_vm6, %v2767_v0  ;;  %vm936_vm3 = vcmask 519552  }
 0x33a   : > { %2462 = vmatpush3.bf16.msra.mxu1 %v2660_v14  ;;  %2465 = vmatprep.mubr.msk.bf16.mxu1 %vm2768_vm0, %v2767_v0 }
 0x33b   : > { %2463 = vmatprep.subr.bf16.mxu1 %v2767_v0 }
 0x33e   : > { %2464 = vmatpush3.bf16.msra.mxu1 %v2661_v15  ;;  %v2675_v15 = vld [vmem:[%s3426_s2] sm:$0xff]  }
 0x33f   : > { %2469 = vmatprep.subr.bf16.mxu1 %v2767_v0 }
 0x40c   : > { %v850_v16 = vpop.f32.mrb[4].mxu1 }
 0x40d   : > { %v856_v17 = vpack.c.bf16 %v850_v16, %v850_v16  ;;  %v2459_v19 = vpop.f32.mrb[5].mxu1  ;;  %v2676_v16 = vld [vmem:[%s3426_s2 + $0x8] sm:$0xff]  }
 0x40e   : > { %v853_v20 = vpop.f32.mrb[6].mxu1  ;;  %v2678_v19 = vld [vmem:[%s3426_s2 + $0x18] sm:$0xff]  }
 0x40f   : > { %v2460_v21 = vpop.f32.mrb[7].mxu1  ;;  %2466 = vmatmul.mubr.msk.bf16.vlgmr.msra.gmra.mrb[8].mxu1 %vm3444_vm5, %v856_v17  ;;  %vm931_vm5 = vcmask 388352   ;;  %v2677_v17 = vld [vmem:[%s3426_s2 + $0x10] sm:$0xff]   ;;  %v2679_v20 = vld [vmem:[%s3426_s2 + $0x20] sm:$0xff]  }
 0x410   : > { %2479 = vmatprep.mubr.msk.bf16.mxu1 %vm2768_vm0, %v2767_v0  ;;  %2470 = vmatpush3.bf16.msra.mxu1 %v2662_v22  ;;  %v2680_v21 = vld [vmem:[%s3426_s2 + $0x28] sm:$0xff]   ;;  %v2681_v22 = vld [vmem:[%s3426_s2 + $0x30] sm:$0xff]  }
 0x411   : > { %2471 = vmatprep.subr.bf16.mxu1 %v2767_v0 }
 0x414   : > { %2472 = vmatpush3.bf16.msra.mxu1 %v2663_v23  ;;  %v2682_v23 = vld [vmem:[%s3426_s2 + $0x38] sm:$0xff]  }
 0x415   : > { %2473 = vmatprep.subr.bf16.mxu1 %v2767_v0 }
 0x418   : > { %2474 = vmatpush3.bf16.msra.mxu1 %v2664_v24  ;;  %v2683_v24 = vld [vmem:[%s3430_s6] sm:$0xff]  }
 0x419   : > { %2475 = vmatprep.subr.bf16.mxu1 %v2767_v0 }
 0x41c   : > { %2476 = vmatpush3.bf16.msra.mxu1 %v2665_v25  ;;  %v2684_v25 = vld [vmem:[%s3426_s2 + $0x40] sm:$0xff]  }
 0x41d   : > { %2477 = vmatprep.subr.bf16.mxu1 %v2767_v0 }
 0x420   : > { %2478 = vmatpush3.bf16.msra.mxu1 %v2666_v26  ;;  %v2307_v26 = vld [vmem:[%s3436_s12 + $0x4] ss:$0 sm:$0xff] }
 0x421   : > { %2483 = vmatprep.subr.bf16.mxu1 %v2767_v0 }
 0x4e2   : > { %v912_v27 = vpop.f32.mrb[8].mxu1 }
 0x4e3   : > { %928 = vrot.lane.b32.xlu0 %v912_v27, %s3453_s17  ;;  %923 = vrot.lane.b32.xlu1 %v912_v27, %s3457_s15  ;;  %v2467_v28 = vpop.f32.mrb[9].mxu1  ;;  %921 = vst.msk [vmem:[#allocation3 + $0x4] sm:$0xf] %vm920_vm7, %v912_v27 }
 0x4e4   : > { %v915_v29 = vpop.f32.mrb[10].mxu1 }
 0x4e5   : > { %v2468_v30 = vpop.f32.mrb[11].mxu1 }
 0x4e6   : > { %v2686_v30 = vld [vmem:[%s3426_s2 + $0x48] sm:$0xff]  }
 0x4e7   : > { %938 = vrot.lane.b32.xlu0 %v912_v27, %s3465_s23  ;;  %933 = vrot.lane.b32.xlu1 %v912_v27, %s2774_s20  ;;  %v2685_v27 = vld [vmem:[%s3430_s6 + $0x8] ss:$0 sps:$4 sm:$0xff]  }
 0x4e8   : > { %v1589_v29 = vsel %vm812_vm4, %v2685_v27, 0 }
 0x555   : > { %v929_v31 = vpop.permute.xlu0 %928  ;;  %v924_v32 = vpop.permute.xlu1 %923 }
 0x556   : > { %927 = vst.msk [vmem:[#allocation3 + $0x3] sm:$0xf] %vm926_vm8, %v924_v32 }
 0x557   : > { %932 = vst.msk [vmem:[#allocation3 + $0x2] sm:$0xf] %vm931_vm5, %v929_v31 }
 0x559   : > { %v939_v33 = vpop.permute.xlu0 %938  ;;  %v934_v34 = vpop.permute.xlu1 %933 }
 0x55a   : > { %937 = vst.msk [vmem:[#allocation3 + $0x1] sm:$0xf] %vm936_vm3, %v934_v34 }
 0x55b   : > { %942 = vst.msk [vmem:[#allocation3] sm:$0xf] %vm941_vm2, %v939_v33 }
 0x562   : > { %v943_v35 = vld [vmem:[#allocation3 + $0x2] sm:$0xf] }
 0x563   : > { %v944_v36 = vpack.c.bf16 %v943_v35, %v943_v35  ;;  %1445 = vst.msk [vmem:[#allocation3] sm:$0xff] %vm918_vm6, %v2767_v0 }
 0x565   : > { %2480 = vmatmul.mubr.msk.bf16.vlgmr.msra.gmra.mrb[12].mxu1 %vm918_vm6, %v944_v36  ;;  %v2687_v36 = vld [vmem:[%s3426_s2 + $0x50] sm:$0xff]  }
 0x566   : > { %2485 = vmatprep.mubr.msk.bf16.mxu1 %vm2768_vm0, %v2767_v0 }
 0x638   : > { %v1027_v38 = vpop.f32.mrb[12].mxu1 }
 0x639   : > { %v1028_v39 = vadd.f32 %v2294_v37, %v1027_v38  ;;  %v2481_v40 = vpop.f32.mrb[13].mxu1  ;;  %v2688_v37 = vld [vmem:[%s3426_s2 + $0x58] sm:$0xff]   ;;  %v1251_v38 = vrot.slane %v3030_v5, 7 }
 0x63a   : > { %v1030_v41 = vpop.f32.mrb[14].mxu1  ;;  %v2689_v40 = vld [vmem:[%s3426_s2 + $0x60] sm:$0xff]  }
 0x63b   : > { %v1033_v42 = vmax.f32 %v1028_v39, 0.0  ;;  %v2482_v43 = vpop.f32.mrb[15].mxu1  ;;  %v1229_v39 = vrot.slane %v3030_v5, 3  ;;  %v1235_v41 = vrot.slane %v3030_v5, 4 }
 0x63c   : > { %v2690_v43 = vld [vmem:[%s3426_s2 + $0x68] sm:$0xff]  }
 0x63d   : > { %1446 = vst.msk [vmem:[#allocation3 + $0x4] sm:$0xf] %vm920_vm7, %v1033_v42  ;;  %v1036_v44 = vpack.c.bf16 %v1033_v42, %v1033_v42  ;;  %vm3466_vm7 = vcmask 130048  }
 0x63f   : > { %v1043_v45 = vsel %vm3449_vm1, %v1036_v44, 0  ;;  %vm1138_vm1 = vcmask 191488  }
 0x640   : > { %2484 = vmatpush3.bf16.msra.mxu1 %v1043_v45  ;;  %1139 = vst.msk [vmem:[#allocation4] sm:$0xf] %vm1138_vm1, %v2767_v0 }
 0x641   : > { %2495 = vmatprep.subr.bf16.mxu1 %v2767_v0 }
 0x643   : > { %2486 = vmatmul.mubr.msk.bf16.vlgmr.msra.gmra.mrb[16].mxu1 %vm3450_vm12, %v2301_v46  ;;  %vm1146_vm12 = vcmask 123968  }
 0x644   : > { %2499 = vmatprep.mubr.msk.bf16.mxu1 %vm2768_vm0, %v2767_v0  ;;  %2496 = vmatpush3.bf16.msra.mxu1 %v2668_v53 }
 0x645   : > { %2497 = vmatprep.subr.bf16.mxu1 %v2767_v0 }
 0x648   : > { %2498 = vmatpush3.bf16.msra.mxu1 %v1177_v55 }
 0x649   : > { %2503 = vmatprep.subr.bf16.mxu1 %v2767_v0 }
 0x716   : > { %v1079_v48 = vpop.f32.mrb[16].mxu1 }
 0x717   : > { %v1085_v49 = vpack.c.bf16 %v1079_v48, %v1079_v48  ;;  %v2487_v50 = vpop.f32.mrb[17].mxu1 }
 0x718   : > { %v1082_v51 = vpop.f32.mrb[18].mxu1 }
 0x719   : > { %v2488_v52 = vpop.f32.mrb[19].mxu1  ;;  %2492 = vmatmul.mubr.msk.bf16.vlgmr.msra.gmra.mrb[8].mxu0 %vm3466_vm7, %v1085_v49  ;;  %vm1140_vm7 = vcmask 58368  }
 0x71a   : > { %1405 = vmatpush1.bf16.msra.mxu0 %v2675_v15 }
 0x71b   : > { %1406 = vmatprep.subr.bf16.mxu0 %v2769_v18 }
 0x71e   : > { %1407 = vmatpush1.bf16.msra.mxu0 %v2676_v16 }
 0x71f   : > { %1408 = vmatprep.subr.bf16.mxu0 %v2769_v18 }
 0x722   : > { %1409 = vmatpush1.bf16.msra.mxu0 %v2677_v17 }
 0x723   : > { %1410 = vmatprep.subr.bf16.mxu0 %v2769_v18 }
 0x726   : > { %1411 = vmatpush1.bf16.msra.mxu0 %v2678_v19 }
 0x727   : > { %1412 = vmatprep.subr.bf16.mxu0 %v2769_v18 }
 0x72a   : > { %1413 = vmatpush1.bf16.msra.mxu0 %v2679_v20 }
 0x72b   : > { %1414 = vmatprep.subr.bf16.mxu0 %v2769_v18 }
 0x72e   : > { %1415 = vmatpush1.bf16.msra.mxu0 %v2680_v21  ;;  %v2338_v21 = vld [vmem:[%s3434_s10 + $0x18] sm:$0x3] }
 0x72f   : > { %1416 = vmatprep.subr.bf16.mxu0 %v2769_v18 }
 0x732   : > { %1417 = vmatpush1.bf16.msra.mxu0 %v2681_v22 }
 0x733   : > { %1418 = vmatprep.subr.bf16.mxu0 %v2769_v18 }
 0x736   : > { %1419 = vmatpush1.bf16.msra.mxu0 %v2682_v23 }
 0x737   : > { %1420 = vmatprep.subr.bf16.mxu0 %v2769_v18 }
 0x73a   : > { %1421 = vmatpush1.bf16.msra.mxu0 %v2684_v25 }
 0x73b   : > { %1422 = vmatprep.subr.bf16.mxu0 %v2769_v18 }
 0x73e   : > { %1423 = vmatpush1.bf16.msra.mxu0 %v2686_v30 }
 0x73f   : > { %1424 = vmatprep.subr.bf16.mxu0 %v2769_v18 }
 0x742   : > { %1425 = vmatpush1.bf16.msra.mxu0 %v2687_v36 }
 0x743   : > { %1426 = vmatprep.subr.bf16.mxu0 %v2769_v18 }
 0x746   : > { %1427 = vmatpush1.bf16.msra.mxu0 %v2688_v37 }
 0x747   : > { %1428 = vmatprep.subr.bf16.mxu0 %v2769_v18 }
 0x74a   : > { %1429 = vmatpush1.bf16.msra.mxu0 %v2689_v40 }
 0x74b   : > { %1430 = vmatprep.subr.bf16.mxu0 %v2769_v18 }
 0x74e   : > { %1431 = vmatpush1.bf16.msra.mxu0 %v2690_v43  ;;  %v2342_v43 = vld [vmem:[%s3434_s10 + $0x20] sm:$0xf] }
 0x74f   : > { %2549 = vmatprep.subr.bf16.mxu0 %v2767_v0 }
 0x7ec   : > { %v1132_v56 = vpop.f32.mrb[8].mxu0 }
 0x7ed   : > { %1141 = vst.msk [vmem:[#allocation4 + $0x2] sm:$0x3] %vm1140_vm7, %v1132_v56  ;;  %1148 = vrot.lane.b32.xlu0 %v1132_v56, %s3457_s15  ;;  %1143 = vrot.lane.b32.xlu1 %v1132_v56, %s3455_s16  ;;  %v2493_v57 = vpop.f32.mrb[9].mxu0  ;;  %s3470_s16 = smov 96  }
 0x7ee   : > { %v1135_v58 = vpop.f32.mrb[10].mxu0 }
 0x7ef   : > { %v2494_v59 = vpop.f32.mrb[11].mxu0 }
 0x7f1   : > { %1452 = vrot.lane.b32.xlu0 %v1033_v42, %s3453_s17  ;;  %1448 = vrot.lane.b32.xlu1 %v1033_v42, %s3457_s15  ;;  %s3468_s15 = smov 8   ;;  %s3469_s17 = smov 32  }
 0x7f5   : > { %1460 = vrot.lane.b32.xlu0 %v1033_v42, %s3465_s23  ;;  %1456 = vrot.lane.b32.xlu1 %v1033_v42, %s2774_s20  ;;  %v1241_v42 = vrot.slane %v3030_v5, 5  ;;  %s2377_s20 = sshll.u32 %s2869_s29, 8 }
 0x7f6   : > { %s3376_s1 = scalar_lea.hbm %s3437_s13, %s2377_s20 }
 0x85f   : > { %v1149_v60 = vpop.permute.xlu0 %1148  ;;  %v1144_v61 = vpop.permute.xlu1 %1143 }
 0x860   : > { %1147 = vst.msk [vmem:[#allocation4 + $0x1] sm:$0x3] %vm1146_vm12, %v1144_v61 }
 0x861   : > { %1152 = vst.msk [vmem:[#allocation4] sm:$0x3] %vm1151_vm11, %v1149_v60 }
 0x863   : > { %v1453_v62 = vpop.permute.xlu0 %1452  ;;  %v1449_v63 = vpop.permute.xlu1 %1448 }
 0x864   : > { %1451 = vst.msk [vmem:[#allocation3 + $0x3] sm:$0xf] %vm926_vm8, %v1449_v63 }
 0x865   : > { %1455 = vst.msk [vmem:[#allocation3 + $0x2] sm:$0xf] %vm931_vm5, %v1453_v62  ;;  %vm3479_vm5 = vcmask 31744  }
 0x867   : > { %v1461_v1 = vpop.permute.xlu0 %1460  ;;  %v1457_v2 = vpop.permute.xlu1 %1456 }
 0x868   : > { %v1153_v3 = vld [vmem:[#allocation4 + $0x1] sm:$0x3]  ;;  %1459 = vst.msk [vmem:[#allocation3 + $0x1] sm:$0xf] %vm936_vm3, %v1457_v2  ;;  %vm3473_vm3 = vcmask 781824  }
 0x869   : > { %1555 = vst.msk [vmem:[#allocation4] sm:$0xf] %vm1138_vm1, %v2767_v0  ;;  %v1154_v7 = vpack.c.bf16 %v1153_v3, %v1153_v3  ;;  %vm3471_vm1 = vcmask 785920  }
 0x86a   : > { %1463 = vst.msk [vmem:[#allocation3] sm:$0xf] %vm941_vm2, %v1461_v1  ;;  %vm3472_vm2 = vcmask 785924  }
 0x86b   : > { %2500 = vmatmul.mubr.msk.bf16.vlgmr.msra.gmra.mrb[20].mxu1 %vm1172_vm15, %v1154_v7 }
 0x86c   : > { %2504 = vmatpush3.bf16.msra.mxu1 %v2670_v4  ;;  %2513 = vmatprep.mubr.msk.bf16.mxu1 %vm2768_vm0, %v2767_v0 }
 0x86d   : > { %2505 = vmatprep.subr.bf16.mxu1 %v2767_v0 }
 0x870   : > { %2506 = vmatpush3.bf16.msra.mxu1 %v2671_v8 }
 0x871   : > { %2507 = vmatprep.subr.bf16.mxu1 %v2767_v0  ;;  %v1464_v13 = vld [vmem:[#allocation3 + $0x2] sm:$0xf] }
 0x872   : > { %v1465_v14 = vpack.c.bf16 %v1464_v13, %v1464_v13 }
 0x874   : > { %2508 = vmatpush3.bf16.msra.mxu1 %v2672_v9 }
 0x875   : > { %2509 = vmatprep.subr.bf16.mxu1 %v2767_v0 }
 0x878   : > { %2510 = vmatpush3.bf16.msra.mxu1 %v2673_v11  ;;  %v2334_v11 = vld [vmem:[%s3436_s12 + $0x5] ss:$0 sm:$0xff] }
 0x879   : > { %2511 = vmatprep.subr.bf16.mxu1 %v2767_v0 }
 0x87c   : > { %2512 = vmatpush3.bf16.msra.mxu1 %v2674_v12 }
 0x87d   : > { %2517 = vmatprep.subr.bf16.mxu1 %v2767_v0 }
 0x87f   : > { %2514 = vmatmul.mubr.msk.bf16.vlgmr.msra.gmra.mrb[24].mxu1 %vm918_vm6, %v1465_v14  ;;  %vm3480_vm6 = vcmask 130048  }
 0x880   : > { %2521 = vmatprep.mubr.msk.bf16.mxu1 %vm2768_vm0, %v2767_v0  ;;  %2518 = vmatpush3.bf16.msra.mxu1 %v2683_v24 }
 0x881   : > { %2519 = vmatprep.subr.bf16.mxu1 %v2767_v0 }
 0x884   : > { %2520 = vmatpush3.bf16.msra.mxu1 %v1589_v29 }
 0x885   : > { %2525 = vmatprep.subr.bf16.mxu1 %v2767_v0 }
 0x93e   : > { %v1213_v28 = vpop.f32.mrb[20].mxu1 }
 0x93f   : > { %v1214_v31 = vadd.f32 %v2307_v26, %v1213_v28  ;;  %v2501_v32 = vpop.f32.mrb[21].mxu1  ;;  %v2340_v26 = vld [vmem:[%s3435_s11 + $0x60] sm:$0xf] }
 0x940   : > { %v1216_v33 = vpop.f32.mrb[22].mxu1  ;;  %v1690_v27 = vsel %vm812_vm4, %v2340_v26, 0  ;;  %v2359_v26 = vld [vmem:[%s3436_s12 + $0x6] ss:$0 sm:$0xff] }
 0x941   : > { %v1219_v34 = vmax.f32 %v1214_v31, 0.0  ;;  %v2502_v35 = vpop.f32.mrb[23].mxu1  ;;  %v2327_v33 = vld [vmem:[%s3436_s12 + $0x3] ss:$0 sm:$0xff] }
 0x943   : > { %1556 = vst.msk [vmem:[#allocation4 + $0x2] sm:$0x3] %vm1140_vm7, %v1219_v34  ;;  %1562 = vrot.lane.b32.xlu0 %v1219_v34, %s3467_s22  ;;  %1558 = vrot.lane.b32.xlu1 %v1219_v34, %s3468_s15  ;;  %vm3483_vm7 = vcmask 261120  }
 0x947   : > { %1252 = vrot.lane.b32.xlu0 %v1251_v38, %s3469_s17  ;;  %1230 = vrot.lane.b32.xlu1 %v1229_v39, %s3469_s17  ;;  %s2707_s17 = sshll.u32 %s2776_s0, 4  ;;  %s2708_s17 = int_to_ptr.vmem [resolvable:$false] %s2707_s17 }
 0x948   : > { %s2709_s30 = scalar_lea.vmem %s2708_s17, 512 }
 0x94b   : > { %1257 = vrot.lane.b32.xlu0 %v3030_v5, %s3465_s23  ;;  %1236 = vrot.lane.b32.xlu1 %v1235_v41, %s3465_s23  ;;  %s431_s23 = sand.u32 1, %s2757_s26  }
 0x94c   : > { %s2260_s24 = sshll.u32 %s431_s23, 4  ;;  %s3382_s29 = scalar_lea.sflag [#allocation6], %s431_s23 }
 0x94d   : > { %s433_s21 = scalar_lea.vmem [#allocation5], %s2260_s24 }
 0x94e   : > { %s2194_s22 = sshll.u32 %s433_s21, 4  ;;  %s3378_s22 = int_to_ptr.vmem [resolvable:$true] %s2194_s22 }
 0x94f   : > { %1242 = vrot.lane.b32.xlu1 %v1241_v42, %s3470_s16  ;;  %s2703_s24 = scalar_lea.vmem %s3378_s22, 256  ;;  %p2710_p0 = scmp.lt.s32.totalorder %s3378_s22, %s2708_s17 }
 0x950   : > { %p2704_p11 = scmp.ne.s32.totalorder %s3378_s22, %s2703_s24  ;;  %p2711_p1 = scmp.lt.s32.totalorder %s2709_s30, %s2703_s24 }
 0x952   : > { %v3245_v44 = vpop.f32.mrb[24].mxu1  ;;  %p2705_p12 = pnand %p2704_p11, %p2886_p5  ;;  %p2712_p2 = por %p2711_p1, %p2710_p0 }
 0x953   : > { %v2515_v45 = vpop.f32.mrb[25].mxu1  ;;  %v1549_v34 = vadd.f32 %v2327_v33, %v3245_v44  ;;  %v2691_v44 = vld [vmem:[%s3435_s11 + $0x80] sm:$0xff]  }
 0x954   : > { %v1551_v46 = vpop.f32.mrb[26].mxu1  ;;  %p2706_p13 = pneg %p2705_p12 }
 0x955   : > { %v2516_v47 = vpop.f32.mrb[27].mxu1  ;;  %v1554_v35 = vmax.f32 %v1549_v34, 0.0 }
 0x956   : > { %p2713_p3 = pnand %p2712_p2, %p2706_p13 }
 0x9b5   : > { %v1563_v48 = vpop.permute.xlu0 %1562  ;;  %v1559_v49 = vpop.permute.xlu1 %1558 }
 0x9b6   : > { %1561 = vst.msk [vmem:[#allocation4 + $0x1] sm:$0x3] %vm1146_vm12, %v1559_v49  ;;  %vm3475_vm12 = vcmask 1043200  }
 0x9b7   : > { %1565 = vst.msk [vmem:[#allocation4] sm:$0x3] %vm1151_vm11, %v1563_v48  ;;  %vm3474_vm11 = vcmask 1048323  }
 0x9b9   : > { %v1253_v18 = vpop.permute.xlu0 %1252  ;;  %v1231_v5 = vpop.permute.xlu1 %1230 }
 0x9ba   : > { %1255 = vst.msk [vmem:[#allocation2 + $0x8] sm:$0xfe] %vm612_vm13, %v1253_v18  ;;  %vm1635_vm13 = vcmask 15360  }
 0x9bb   : > { %1256 = vst.msk [vmem:[#allocation2 + $0x18] sm:$0x1] %vm614_vm14, %v1253_v18  ;;  %vm3477_vm14 = vcmask 64512   ;;  %v2696_v18 = vld [vmem:[%s3435_s11 + $0xa0] sm:$0xff]  }
 0x9bc   : > { %1233 = vst.msk [vmem:[#allocation2] sm:$0xe0] %vm582_vm9, %v1231_v5  ;;  %vm3476_vm9 = vcmask 785408   ;;  %vm3481_vm8 = vmmov %vm3477_vm14 }
 0x9bd   : > { %1234 = vst.msk [vmem:[#allocation2 + $0x10] sm:$0x1f] %vm584_vm10, %v1231_v5  ;;  %v1258_v50 = vpop.permute.xlu0 %1257  ;;  %v1237_v51 = vpop.permute.xlu1 %1236  ;;  %vm1639_vm10 = vcmask 1040384   ;;  %v2311_v5 = vld [vmem:[%s3436_s12 + $0x1] ss:$0 sm:$0xff] }
 0x9be   : > { %1260 = vst.msk [vmem:[#allocation2 + $0x8] sm:$0xff] %vm3471_vm1, %v1258_v50  ;;  %v1566_v52 = vld [vmem:[#allocation4 + $0x1] sm:$0x3] }
 0x9bf   : > { %1239 = vst.msk [vmem:[#allocation2] sm:$0xf0] %vm3472_vm2, %v1237_v51  ;;  %v1567_v53 = vpack.c.bf16 %v1566_v52, %v1566_v52  ;;  %vm3486_vm2 = vmmov %vm3479_vm5 }
 0x9c0   : > { %1240 = vst.msk [vmem:[#allocation2 + $0x10] sm:$0xf] %vm3473_vm3, %v1237_v51 }
 0x9c1   : > { %v1243_v54 = vpop.permute.xlu1 %1242  ;;  %2522 = vmatmul.mubr.msk.bf16.vlgmr.msra.gmra.mrb[28].mxu1 %vm1172_vm15, %v1567_v53  ;;  %vm3478_vm15 = vcmask 1041408  }
 0x9c2   : > { %1245 = vst.msk [vmem:[#allocation2] sm:$0xf8] %vm3474_vm11, %v1243_v54  ;;  %2527 = vmatprep.mubr.msk.bf16.mxu1 %vm2768_vm0, %v2767_v0  ;;  %v1264_v56 = vld [vmem:[#allocation2 + $0x18] sm:$0x7]  ;;  %vm3485_vm1 = vmmov %vm3478_vm15 }
 0x9c3   : > { %1246 = vst.msk [vmem:[#allocation2 + $0x10] sm:$0x7] %vm3475_vm12, %v1243_v54 }
 0x9c5   : > { %v1262_v55 = vld [vmem:[#allocation2 + $0x8] sm:$0xf8] }
 0x9c6   : > { %v1266_v57 = vpack.c.bf16 %v1264_v56, %v1262_v55 }
 0x9c8   : > { %v1309_v58 = vshrl.u32 %v1266_v57, 16  ;;  %v1312_v59 = vshll.u32 %v1266_v57, 16 }
 0x9c9   : > { %v1261_v60 = vld [vmem:[#allocation2] sm:$0xf8] }
 0x9ca   : > { %v1263_v61 = vld [vmem:[#allocation2 + $0x10] sm:$0x7]  ;;  %v1311_v62 = vrot.slane %v1309_v58, 1  ;;  %v1314_v63 = vrot.slane %v1312_v59, 2  ;;  %v2692_v59 = vld [vmem:[%s3434_s10 + $0x28] sm:$0xff]  }
 0x9cb   : > { %v1265_v1 = vpack.c.bf16 %v1263_v61, %v1261_v60  ;;  %v2693_v60 = vld [vmem:[%s3431_s7] sm:$0xff]   ;;  %v2694_v61 = vld [vmem:[%s3431_s7 + $0x8] sm:$0xff]  }
 0x9cc   : > { %v1315_v2 = vor.u32 %v1314_v63, %v1311_v62  ;;  %v2695_v62 = vld [vmem:[%s3431_s7 + $0x10] sm:$0xff]   ;;  %v2697_v63 = vld [vmem:[%s3431_s7 + $0x18] sm:$0xff]  }
 0x9cd   : > { %v1301_v3 = vshrl.u32 %v1265_v1, 16  ;;  %v1304_v4 = vshll.u32 %v1265_v1, 16  ;;  %v2698_v1 = vld [vmem:[%s3435_s11 + $0xa8] sm:$0xff]  }
 0x9ce   : > { %2326 = vmatprep.mubr.msk.bf16.mxu0 %vm3476_vm9, %v1315_v2  ;;  %v2038_v2 = vrot.slane %v2926_v10, 4 }
 0x9cf   : > { %v1303_v7 = vrot.slane %v1301_v3, 1  ;;  %v1306_v8 = vrot.slane %v1304_v4, 2 }
 0x9d0   : > { %v2039_v3 = vadd.f32 %v2038_v2, %v2926_v10 }
 0x9d1   : > { %v1307_v9 = vor.u32 %v1306_v8, %v1303_v7 }
 0x9d2   : > { %v2040_v7 = vrot.slane %v2039_v3, 2 }
 0x9d3   : > { %1437 = vmatmul.mubr.bf16.vlgmr.msra.gmra.mrb[12].mxu0 %v1307_v9 }
 0x9d4   : > { %2551 = vmatprep.mubr.msk.bf16.mxu0 %vm2768_vm0, %v2767_v0 }
 0xa94   : > { %v1625_v12 = vpop.f32.mrb[28].mxu1 }
 0xa95   : > { %v1626_v13 = vadd.f32 %v2334_v11, %v1625_v12  ;;  %v2523_v14 = vpop.f32.mrb[29].mxu1 }
 0xa96   : > { %v1628_v15 = vpop.f32.mrb[30].mxu1  ;;  %v2700_v14 = vld [vmem:[%s3432_s8 + $0x8] sm:$0xff]  }
 0xa97   : > { %v1631_v16 = vmax.f32 %v1626_v13, 0.0  ;;  %v2524_v17 = vpop.f32.mrb[31].mxu1  ;;  %v2041_v13 = vadd.f32 %v2040_v7, %v2039_v3  ;;  %v2701_v15 = vld [vmem:[%s3432_s8 + $0x10] sm:$0xff]  }
 0xa98   : > { %v2702_v17 = vld [vmem:[%s3432_s8 + $0x18] sm:$0xff]  }
 0xa99   : > { %v1634_v19 = vpack.c.bf16 %v1631_v16, %v1631_v16  ;;  %v2042_v10 = vrot.slane %v2041_v13, 1 }
 0xa9b   : > { %v1641_v20 = vsel %vm1639_vm10, %v1634_v19, 0  ;;  %v2043_v16 = vadd.f32 %v2042_v10, %v2041_v13 }
 0xa9c   : > { %2526 = vmatpush3.bf16.msra.mxu1 %v1641_v20 }
 0xa9d   : > { %2531 = vmatprep.subr.bf16.mxu1 %v2767_v0  ;;  %v2044_v20 = vpack.c.bf16 %v2043_v16, %v2043_v16 }
 0xa9f   : > { %2528 = vmatmul.mubr.msk.bf16.vlgmr.msra.gmra.mrb[32].mxu1 %vm1635_vm13, %v2338_v21 }
 0xaa0   : > { %2533 = vmatprep.mubr.msk.bf16.mxu1 %vm2768_vm0, %v2767_v0  ;;  %2532 = vmatpush3.bf16.msra.mxu1 %v1690_v27 }
 0xaa1   : > { %2537 = vmatprep.subr.bf16.mxu1 %v2767_v0 }
 0xaa6   : > { %v1438_v22 = vpop.f32.mrb[12].mxu0 }
 0xaa7   : > { %v1440_v23 = vpop.f32.mrb[13].mxu0  ;;  %v1439_v50 = vadd.f32 %v2311_v5, %v1438_v22 }
 0xaa8   : > { %v1441_v24 = vpop.f32.mrb[14].mxu0 }
 0xaa9   : > { %v1442_v25 = vpop.f32.mrb[15].mxu0  ;;  %v1444_v51 = vmax.f32 %v1439_v50, 0.0  ;;  %v2121_v24 = vld [vmem:[%s3433_s9] sm:$0x3] }
 0xaaa   : > { %v2127_v25 = vsel %vm3485_vm1, %v2121_v24, 0 }
 0xb72   : > { %v1677_v28 = vpop.f32.mrb[32].mxu1 }
 0xb73   : > { %v1683_v29 = vpack.c.bf16 %v1677_v28, %v1677_v28  ;;  %v2529_v30 = vpop.f32.mrb[33].mxu1 }
 0xb74   : > { %v1680_v31 = vpop.f32.mrb[34].mxu1 }
 0xb75   : > { %v2530_v32 = vpop.f32.mrb[35].mxu1  ;;  %2534 = vmatmul.mubr.msk.bf16.vlgmr.msra.gmra.mrb[36].mxu1 %vm3477_vm14, %v1683_v29 }
 0xb76   : > { %2539 = vmatprep.mubr.msk.bf16.mxu1 %vm2768_vm0, %v2767_v0 }
 0xc48   : > { %v1726_v36 = vpop.f32.mrb[36].mxu1 }
 0xc49   : > { %v1727_v37 = vadd.f32 %v1726_v36, %v1554_v35  ;;  %v2535_v38 = vpop.f32.mrb[37].mxu1 }
 0xc4a   : > { %v1729_v39 = vpop.f32.mrb[38].mxu1 }
 0xc4b   : > { %v1734_v40 = vpack.c.bf16 %v1727_v37, %v1727_v37  ;;  %v2536_v41 = vpop.f32.mrb[39].mxu1 }
 0xc4c   : > { %v2172_v41 = vlaneseq }
 0xc4d   : > { %v1739_v42 = vsel %vm3478_vm15, %v1734_v40, 0 }
 0xc4e   : > { %2538 = vmatpush3.bf16.msra.mxu1 %v1739_v42  ;;  %v2173_v42 = vshrl.u32 %v2172_v41, 7 }
 0xc4f   : > { %2543 = vmatprep.subr.bf16.mxu1 %v2767_v0 }
 0xc51   : > { %2540 = vmatmul.mubr.msk.bf16.vlgmr.msra.gmra.mrb[40].mxu1 %vm3479_vm5, %v2342_v43  ;;  %v2122_v43 = vld [vmem:[%s3436_s12 + $0x7] sm:$0x1] }
 0xc52   : > { %2545 = vmatprep.mubr.msk.bf16.mxu1 %vm2768_vm0, %v2767_v0  ;;  %2544 = vmatpush3.bf16.msra.mxu1 %v2691_v44 }
 0xc53   : > { %2555 = vmatprep.subr.bf16.mxu1 %v2767_v0 }
 0xd24   : > { %v1775_v45 = vpop.f32.mrb[40].mxu1 }
 0xd25   : > { %v1781_v46 = vpack.c.bf16 %v1775_v45, %v1775_v45  ;;  %v2541_v47 = vpop.f32.mrb[41].mxu1 }
 0xd26   : > { %v1778_v48 = vpop.f32.mrb[42].mxu1 }
 0xd27   : > { %v2542_v49 = vpop.f32.mrb[43].mxu1  ;;  %2546 = vmatmul.mubr.msk.bf16.vlgmr.msra.gmra.mrb[44].mxu1 %vm3480_vm6, %v1781_v46  ;;  %v2174_v46 = vsub.s32 0, %v2173_v42 }
 0xd28   : > { %2559 = vmatprep.mubr.msk.bf16.mxu1 %vm2768_vm0, %v2767_v0  ;;  %2556 = vmatpush3.bf16.msra.mxu1 %v2696_v18 }
 0xd29   : > { %2557 = vmatprep.subr.bf16.mxu1 %v2767_v0 }
 0xd2c   : > { %2558 = vmatpush3.bf16.msra.mxu1 %v2698_v1 }
 0xd2d   : > { %2575 = vmatprep.subr.bf16.mxu1 %v2767_v0 }
 0xdfa   : > { %v1828_v52 = vpop.f32.mrb[44].mxu1 }
 0xdfb   : > { %v1829_v53 = vadd.f32 %v1828_v52, %v1444_v51  ;;  %v2547_v54 = vpop.f32.mrb[45].mxu1 }
 0xdfc   : > { %v1831_v55 = vpop.f32.mrb[46].mxu1 }
 0xdfd   : > { %v1837_v56 = vpack.c.bf16 %v1829_v53, %v1829_v53  ;;  %v2548_v57 = vpop.f32.mrb[47].mxu1 }
 0xdff   : > { %v1847_v58 = vsel %vm812_vm4, %v1837_v56, 0  ;;  %vm3482_vm4 = vcmask 523264  }
 0xe00   : > { %2550 = vmatpush3.bf16.msra.mxu0 %v1847_v58 }
 0xe01   : > { %2563 = vmatprep.subr.bf16.mxu0 %v2767_v0 }
 0xe03   : > { %2552 = vmatmul.mubr.msk.bf16.vlgmr.msra.gmra.mrb[16].mxu0 %vm3481_vm8, %v2692_v59 }
 0xe04   : > { %2564 = vmatpush3.bf16.msra.mxu0 %v2693_v60  ;;  %2571 = vmatprep.mubr.msk.bf16.mxu0 %vm2768_vm0, %v2767_v0 }
 0xe05   : > { %2565 = vmatprep.subr.bf16.mxu0 %v2767_v0 }
 0xe08   : > { %2566 = vmatpush3.bf16.msra.mxu0 %v2694_v61 }
 0xe09   : > { %2567 = vmatprep.subr.bf16.mxu0 %v2767_v0 }
 0xe0c   : > { %2568 = vmatpush3.bf16.msra.mxu0 %v2695_v62 }
 0xe0d   : > { %2569 = vmatprep.subr.bf16.mxu0 %v2767_v0 }
 0xe10   : > { %2570 = vmatpush3.bf16.msra.mxu0 %v2697_v63 }
 0xe11   : > { %2587 = vmatprep.subr.bf16.mxu0 %v2767_v0 }
 0xe13   : > { %2572 = vmatmul.mubr.msk.bf16.vlgmr.msra.gmra.mrb[20].mxu0 %vm3482_vm4, %v2919_v6  ;;  %v2699_v6 = vld [vmem:[%s3432_s8] sm:$0xff]  }
 0xe14   : > { %2589 = vmatprep.mubr.msk.bf16.mxu0 %vm2768_vm0, %v2767_v0  ;;  %2588 = vmatpush3.bf16.msra.mxu0 %v2127_v25 }
 0xed6   : > { %v1883_v4 = vpop.f32.mrb[16].mxu0 }
 0xed7   : > { %v2553_v8 = vpop.f32.mrb[17].mxu0 }
 0xed8   : > { %v1886_v9 = vpop.f32.mrb[18].mxu0 }
 0xed9   : > { %v1890_v11 = vpack.c.bf16 %v1886_v9, %v1883_v4  ;;  %v2554_v12 = vpop.f32.mrb[19].mxu0 }
 0xedb   : > { %2560 = vmatmul.mubr.msk.bf16.vlgmr.msra.gmra.mrb[48].mxu1 %vm3483_vm7, %v1890_v11 }
 0xedc   : > { %2576 = vmatpush3.bf16.msra.mxu1 %v2699_v6  ;;  %2583 = vmatprep.mubr.msk.bf16.mxu1 %vm2768_vm0, %v2767_v0  ;;  %vm3484_vm0 = vmmov %vm3482_vm4 }
 0xedd   : > { %2577 = vmatprep.subr.bf16.mxu1 %v2767_v0  ;;  %vm3487_vm3 = vmmov %vm3484_vm0 }
 0xede   : > { %vm3488_vm11 = vmmov %vm3484_vm0 }
 0xee0   : > { %2578 = vmatpush3.bf16.msra.mxu1 %v2700_v14 }
 0xee1   : > { %2579 = vmatprep.subr.bf16.mxu1 %v2767_v0 }
 0xee4   : > { %2580 = vmatpush3.bf16.msra.mxu1 %v2701_v15 }
 0xee5   : > { %2581 = vmatprep.subr.bf16.mxu1 %v2767_v0 }
 0xee6   : > { %v2026_v19 = vpop.f32.mrb[20].mxu0 }
 0xee7   : > { %v2573_v21 = vpop.f32.mrb[21].mxu0  ;;  %v2027_v0 = vadd.f32 %v2359_v26, %v2026_v19 }
 0xee8   : > { %2582 = vmatpush3.bf16.msra.mxu1 %v2702_v17  ;;  %v2029_v22 = vpop.f32.mrb[22].mxu0 }
 0xee9   : > { %v2574_v23 = vpop.f32.mrb[23].mxu0  ;;  %v2030_v27 = vadd.f32 %v2359_v26, %v2029_v22  ;;  %v2033_v28 = vmax.f32 %v2027_v0, 0.0 }
 0xeeb   : > { %2584 = vmatmul.mubr.msk.bf16.vlgmr.msra.gmra.mrb[52].mxu1 %vm3484_vm0, %v2044_v20  ;;  %v2034_v29 = vmax.f32 %v2030_v27, 0.0 }
 0xfae   : > { %v1945_v30 = vpop.f32.mrb[48].mxu1 }
 0xfaf   : > { %v2170_v31 = vmul.f32 %v2033_v28, %v1945_v30  ;;  %v2561_v32 = vpop.f32.mrb[49].mxu1 }
 0xfb0   : > { %v1948_v33 = vpop.f32.mrb[50].mxu1 }
 0xfb1   : > { %v2171_v34 = vmul.f32 %v2034_v29, %v1948_v33  ;;  %v2562_v35 = vpop.f32.mrb[51].mxu1 }
 0xfbe   : > { %v2114_v36 = vpop.f32.mrb[52].mxu1 }
 0xfbf   : > { %v2120_v37 = vpack.c.bf16 %v2114_v36, %v2114_v36  ;;  %v2585_v38 = vpop.f32.mrb[53].mxu1 }
 0xfc0   : > { %v2117_v39 = vpop.f32.mrb[54].mxu1 }
 0xfc1   : > { %2590 = vmatmul.mubr.msk.bf16.vlgmr.msra.gmra.mrb[24].mxu0 %vm3486_vm2, %v2120_v37  ;;  %v2586_v40 = vpop.f32.mrb[55].mxu1 }
0x1094   : > { %v2163_v44 = vpop.f32.mrb[24].mxu0 }
0x1095   : > { %v2164_v45 = vadd.f32 %v2163_v44, %v2122_v43  ;;  %v2591_v47 = vpop.f32.mrb[25].mxu0 }
0x1096   : > { %v2166_v48 = vpop.f32.mrb[26].mxu0 }
0x1097   : > { %v2169_v49 = vmax.f32 %v2164_v45, 0.0  ;;  %v2592_v18 = vpop.f32.mrb[27].mxu0 }
0x1099   : > { %v2175_v5 = vrot.slane %v2169_v49, %v2174_v46 }
0x109b   : > { %v2176_v50 = vadd.f32 %v2175_v5, %v2170_v31  ;;  %v2177_v51 = vadd.f32 %v2175_v5, %v2171_v34 }
0x109d   : > { %2178 = vst.msk [vmem:[%s433_s21] sm:$0xff] %vm3487_vm3, %v2176_v50 }
0x109e   : > { %2179 = vst.msk [vmem:[%s433_s21 + $0x8] sm:$0xff] %vm3488_vm11, %v2177_v51 }
0x109f   : > { %2716 = shalt.err (!%p2713_p3)
}
0x10a0   : > { %s2717_s23 = scalar_lea.hbm %s3376_s1, 256  ;;  %s2721_s16 = scalar_lea.hbm %s3437_s13, 512 }
0x10a1   : > { %p2718_p4 = scmp.ne.s32.totalorder %s3376_s1, %s2717_s23  ;;  %p2722_p9 = scmp.lt.u32.totalorder %s3376_s1, %s3437_s13 }
0x10a2   : > { %p2723_p10 = scmp.lt.u32.totalorder %s2721_s16, %s2717_s23  ;;  %p2725_p12 = scmp.lt.u32.totalorder %s2717_s23, %s3376_s1 }
0x10a3   : > { %p2719_p7 = pnand %p2718_p4, %p2886_p5 }
0x10a4   : > { %p2724_p11 = por %p2723_p10, %p2722_p9 }
0x10a5   : > { %p2720_p8 = pneg %p2719_p7 }
0x10a6   : > { %p2726_p13 = por %p2725_p12, %p2724_p11 }
0x10a8   : > { %p2727_p0 = pnand %p2726_p13, %p2720_p8 }
0x10aa   : > { %2730 = shalt.err (!%p2727_p0)
}
0x10ab   : > { %s2777_s24 = smov 128  }
0x10ac   : > { %2593 = dma.vmem_to_hbm [thread:$0]  (%p2886_p5), %s3378_s22, 256, %s3376_s1, %s3382_s29, %s2777_s24, %s2777_s24, %s3468_s15  }
0x10ad PF: > { %p2599_p1 = scmp.ge.s32.totalorder %s2765_s28, 2  ;;  %s2209_s30 = sand.u32 1, %s2753_s25  }
0x10ae   : > { %s2210_s23 = scalar_lea.sflag [#allocation6], %s2209_s30 }
0x10af   : > { %p2596_p2 = pnand %p2599_p1, %p2890_p6 }
0x10b1   : > { %2748 = dma.done.wait (!%p2596_p2), %s2210_s23, 256  }
0x10b2   : > { %2750 = vsyncadd (!%p2596_p2), %s2210_s23, 4294967040  ;;  %s3489_s18 = sld [smem:[#allocation8_spill]]  ;;  %p23_p3 = scmp.ge.s32.totalorder %s2873_s14, 4  }
0x10b3   : > { %s3490_s25 = smov %s2757_s26  ;;  %s3491_s26 = smov %s2761_s27 }
0x10b4   : > { %s3493_s28 = smov %s2873_s14  ;;  %25 = sbr.rel (!%p23_p3) target bundleno = 6 (0x6), region = 117 }
0x10b8   : > { %s3492_s27 = smov %s3489_s18 }
0x10bb   :  { %2215 = vsyncpa [#allocation6], 1 }
0x10bc   :  { %2217 = vsyncpa [#allocation6 + $0x1], 1 }

</bundles_post_ra>
